<compile_context>
chip_gen: v6e
topology: v6e:2x2x1
jax: 0.10.0
libtpu: 0.0.40
codegen_flags: <defaults>
</compile_context>

<pallas_src>
import functools

import jax
import jax.numpy as jnp
from jax.experimental import pallas as pl
from jax.experimental.pallas import tpu as pltpu


# ----------------------------------------------------------------------------
# small helpers
# ----------------------------------------------------------------------------
_CompilerParams = getattr(pltpu, "CompilerParams", None)
if _CompilerParams is None:  # older jax fallback
    _CompilerParams = getattr(pltpu, "TPUCompilerParams")


def _cparams(dim_sem, vmem_bytes=None):
    kwargs = dict(dimension_semantics=dim_sem)
    if vmem_bytes is not None:
        kwargs["vmem_limit_bytes"] = vmem_bytes
    return _CompilerParams(**kwargs)


def _pick_tile(dim, target, align):
    """Largest multiple of `align` that divides `dim` and is <= target, else full dim."""
    if dim <= target:
        return dim
    t = (min(target, dim) // align) * align
    while t >= align:
        if dim % t == 0:
            return t
        t -= align
    return dim


def _recip(x):
    if hasattr(pl, "reciprocal"):
        return pl.reciprocal(x, approx=True)
    return 1.0 / x


def _default_vmem_limit():
    # leave ~16 MiB headroom for compiler scratch / double-buffering (matters on
    # v7x where physical VMEM per TensorCore is only 64 MiB).
    cap = None
    try:
        info = pltpu.get_tpu_info()
        cap = getattr(info, "vmem_capacity_bytes", None)
    except Exception:
        cap = None
    if not cap:
        return 48 * 1024 * 1024
    return int(max(32 * 1024 * 1024,
                   min(cap - 16 * 1024 * 1024, 100 * 1024 * 1024)))


_VMEM_LIMIT = _default_vmem_limit()


# ----------------------------------------------------------------------------
# Pallas kernels
# ----------------------------------------------------------------------------
def _matmul_kernel(x_ref, w_ref, o_ref, acc_ref):
    # o = x @ W_t (bf16 x bf16 -> f32 accumulate -> bf16 store), no bias
    @pl.when(pl.program_id(2) == 0)
    def _():
        acc_ref[...] = jnp.zeros_like(acc_ref)

    acc_ref[...] += jnp.dot(x_ref[...], w_ref[...],
                            preferred_element_type=jnp.float32)

    @pl.when(pl.program_id(2) == pl.num_programs(2) - 1)
    def _():
        o_ref[...] = acc_ref[...].astype(o_ref.dtype)


def _matmul_add_ln_kernel(x_ref, w_ref, res_ref, g_ref, b_ref, o_ref, acc_ref):
    # o = LayerNorm(res + x @ W_t); full output row kept in lanes (tn == N) so the
    # add+LN epilogue runs in the last-k pl.when (no separate add+LN HBM pass).
    k = pl.program_id(1)

    @pl.when(k == 0)
    def _():
        acc_ref[...] = jnp.zeros_like(acc_ref)

    acc_ref[...] += jnp.dot(x_ref[...], w_ref[...],
                            preferred_element_type=jnp.float32)

    @pl.when(k == pl.num_programs(1) - 1)
    def _():
        z = acc_ref[...] + res_ref[...].astype(jnp.float32)
        mu = jnp.mean(z, axis=-1, keepdims=True)
        zc = z - mu
        var = jnp.mean(zc * zc, axis=-1, keepdims=True)
        o_ref[...] = (zc * jax.lax.rsqrt(var + 1e-5) * g_ref[...]
                      + b_ref[...]).astype(o_ref.dtype)


def _ffn_add_ln_kernel(x_ref, w1_ref, b1_ref, w2_ref, b2_ref, g_ref, bb_ref,
                       o_ref, acc_ref):
    # LayerNorm(x + W2 @ relu(W1 @ x + b1) + b2), tiled over d_inner (grid axis 1)
    # with an f32 accumulator; the hidden activation never hits HBM and the
    # residual/LN epilogue is fused into the last d_inner step.
    j = pl.program_id(1)

    @pl.when(j == 0)
    def _():
        acc_ref[...] = jnp.zeros_like(acc_ref)

    h = jnp.dot(x_ref[...], w1_ref[...],
                preferred_element_type=jnp.float32) + b1_ref[...]
    h = jnp.maximum(h, 0.0)
    acc_ref[...] += jnp.dot(h.astype(jnp.bfloat16), w2_ref[...],
                            preferred_element_type=jnp.float32)

    @pl.when(j == pl.num_programs(1) - 1)
    def _():
        z = acc_ref[...] + b2_ref[...] + x_ref[...].astype(jnp.float32)
        mu = jnp.mean(z, axis=-1, keepdims=True)
        zc = z - mu
        var = jnp.mean(zc * zc, axis=-1, keepdims=True)
        o_ref[...] = (zc * jax.lax.rsqrt(var + 1e-5) * g_ref[...]
                      + bb_ref[...]).astype(o_ref.dtype)


def _attn_kernel(q_ref, k_ref, v_ref, rk_ref, rwb_ref, rrb_ref, o_ref,
                 *, scale, use_xlu_roll):
    # Fused relative multi-head attention for ONE (batch, head) pair:
    #   AC = (q + r_w_bias) @ K^T ; BD = rel_shift((q + r_r_bias) @ Rk^T)
    #   softmax(causal_mask(scale * (AC + BD))) @ V
    q = q_ref[0, 0].astype(jnp.float32)          # (qlen, dh)
    k = k_ref[0, 0]                              # (klen, dh) bf16
    v = v_ref[0, 0]                              # (klen, dh) bf16
    rk = rk_ref[0]                               # (klen, dh) bf16
    rwq = (q + rwb_ref[0]).astype(jnp.bfloat16)
    rrq = (q + rrb_ref[0]).astype(jnp.bfloat16)

    dims_bt = (((1,), (1,)), ((), ()))           # A @ B^T (contract last dims)
    ac = jax.lax.dot_general(rwq, k, dims_bt, preferred_element_type=jnp.float32)
    bd = jax.lax.dot_general(rrq, rk, dims_bt, preferred_element_type=jnp.float32)

    qlen, klen = ac.shape
    # In-register rel_shift (klen == qlen, mem_len == 0): row i needs
    # bd[i, (j - (i + 1)) mod klen] on the causal (j <= i) region; implemented as
    # a log2(qlen) barrel shifter of uniform rolls.  Wrapped entries land only on
    # the causally-masked j > i region, masked to -1e30 below (scores stay f32).
    if use_xlu_roll:
        roll = lambda x, s: pltpu.roll(x, s, 1)       # XLU lane-rotate path
    else:
        roll = lambda x, s: jnp.roll(x, s, axis=1)    # robust for small klen
    row = jax.lax.broadcasted_iota(jnp.int32, (qlen, 1), 0)
    bd = roll(bd, 1)
    nbits = max(1, (qlen - 1).bit_length())
    for b in range(nbits):
        rolled = roll(bd, 1 << b)
        bd = jnp.where(((row >> b) & 1) == 1, rolled, bd)

    s = (ac + bd) * scale
    col2 = jax.lax.broadcasted_iota(jnp.int32, (qlen, klen), 1)
    row2 = jax.lax.broadcasted_iota(jnp.int32, (qlen, klen), 0)
    s = jnp.where(col2 > row2, jnp.float32(-1e30), s)   # causal mask, in-kernel

    m = jnp.max(s, axis=-1, keepdims=True)
    e = jnp.exp(s - m)
    p = (e * _recip(jnp.sum(e, axis=-1, keepdims=True))).astype(jnp.bfloat16)
    out = jax.lax.dot_general(p, v, (((1,), (0,)), ((), ())),
                              preferred_element_type=jnp.float32)
    o_ref[0, 0] = out.astype(o_ref.dtype)


def _nll_kernel(h_ref, w_ref, b_ref, t_ref, loss_ref, m_ref, l_ref, p_ref, *, tv):
    # Online (flash-style) logsumexp over vocab tiles:
    #   loss = logsumexp(logits) - logits[target]
    j = pl.program_id(1)

    @pl.when(j == 0)
    def _():
        m_ref[...] = jnp.full_like(m_ref, -jnp.inf)
        l_ref[...] = jnp.zeros_like(l_ref)
        p_ref[...] = jnp.zeros_like(p_ref)

    logits = jnp.dot(h_ref[...], w_ref[...],
                     preferred_element_type=jnp.float32) + b_ref[...]
    rows, cols = logits.shape
    col = jax.lax.broadcasted_iota(jnp.int32, (rows, cols), 1) + j * tv
    hit = col == t_ref[...]
    p_ref[...] += jnp.sum(jnp.where(hit, logits, 0.0), axis=-1, keepdims=True)

    m_new = jnp.maximum(m_ref[...], jnp.max(logits, axis=-1, keepdims=True))
    l_ref[...] = (l_ref[...] * jnp.exp(m_ref[...] - m_new)
                  + jnp.sum(jnp.exp(logits - m_new), axis=-1, keepdims=True))
    m_ref[...] = m_new

    @pl.when(j == pl.num_programs(1) - 1)
    def _():
        loss_ref[...] = m_ref[...] + jnp.log(l_ref[...]) - p_ref[...]


# ----------------------------------------------------------------------------
# Pallas wrappers
# ----------------------------------------------------------------------------
def matmul(x, w_t):
    # x: (M, K) bf16, w_t: (K, N) bf16 pre-transposed weight (no bias) -> bf16
    M, K = x.shape
    _, N = w_t.shape
    tm = _pick_tile(M, 512, 8)
    tk = _pick_tile(K, 512, 128)
    tn = _pick_tile(N, 1024, 128)
    return pl.pallas_call(
        _matmul_kernel,
        grid=(M // tm, N // tn, K // tk),
        in_specs=[pl.BlockSpec((tm, tk), lambda i, j, k: (i, k)),
                  pl.BlockSpec((tk, tn), lambda i, j, k: (k, j))],
        out_specs=pl.BlockSpec((tm, tn), lambda i, j, k: (i, j)),
        out_shape=jax.ShapeDtypeStruct((M, N), jnp.bfloat16),
        scratch_shapes=[pltpu.VMEM((tm, tn), jnp.float32)],
        compiler_params=_cparams(("parallel", "parallel", "arbitrary"),
                                 _VMEM_LIMIT),
    )(x, w_t)


def matmul_add_ln(x, w_t, resid, g, b):
    # LayerNorm(resid + x @ w_t), full N (= d_model) kept in lanes
    M, K = x.shape
    N = w_t.shape[1]
    tm = _pick_tile(M, 512, 8)
    tk = _pick_tile(K, 512, 128)
    return pl.pallas_call(
        _matmul_add_ln_kernel,
        grid=(M // tm, K // tk),
        in_specs=[pl.BlockSpec((tm, tk), lambda i, k: (i, k)),
                  pl.BlockSpec((tk, N), lambda i, k: (k, 0)),
                  pl.BlockSpec((tm, N), lambda i, k: (i, 0)),
                  pl.BlockSpec((1, N), lambda i, k: (0, 0)),
                  pl.BlockSpec((1, N), lambda i, k: (0, 0))],
        out_specs=pl.BlockSpec((tm, N), lambda i, k: (i, 0)),
        out_shape=jax.ShapeDtypeStruct((M, N), jnp.bfloat16),
        scratch_shapes=[pltpu.VMEM((tm, N), jnp.float32)],
        compiler_params=_cparams(("parallel", "arbitrary"), _VMEM_LIMIT),
    )(x, w_t, resid, g.reshape(1, N), b.reshape(1, N))


def ffn_add_ln(x, w1_t, b1, w2_t, b2, g, bb):
    # LayerNorm(x + FFN(x)) fused; d_inner tiled on grid axis 1
    M, D = x.shape
    DI = w1_t.shape[1]
    tm = _pick_tile(M, 512, 8)
    tj = _pick_tile(DI, 512, 128)
    return pl.pallas_call(
        _ffn_add_ln_kernel,
        grid=(M // tm, DI // tj),
        in_specs=[pl.BlockSpec((tm, D), lambda i, j: (i, 0)),
                  pl.BlockSpec((D, tj), lambda i, j: (0, j)),
                  pl.BlockSpec((1, tj), lambda i, j: (0, j)),
                  pl.BlockSpec((tj, D), lambda i, j: (j, 0)),
                  pl.BlockSpec((1, D), lambda i, j: (0, 0)),
                  pl.BlockSpec((1, D), lambda i, j: (0, 0)),
                  pl.BlockSpec((1, D), lambda i, j: (0, 0))],
        out_specs=pl.BlockSpec((tm, D), lambda i, j: (i, 0)),
        out_shape=jax.ShapeDtypeStruct((M, D), jnp.bfloat16),
        scratch_shapes=[pltpu.VMEM((tm, D), jnp.float32)],
        compiler_params=_cparams(("parallel", "arbitrary"), _VMEM_LIMIT),
    )(x, w1_t, b1, w2_t, b2, g.reshape(1, D), bb.reshape(1, D))


def fused_rel_attention(q, k, v, rk, r_w_bias, r_r_bias, d_head):
    # q/k/v: (bsz, H, qlen, dh) bf16; rk: (H, klen, dh) bf16; biases: (H, 1, dh) f32
    bsz, H, qlen, dh = q.shape
    klen = k.shape[2]
    # barrel-shift rel_shift relies on klen == qlen (mem_len == 0, same_length=False)
    assert klen == qlen, "mem_len > 0 / same_length not supported by this kernel"
    scale = 1.0 / (d_head ** 0.5)
    use_xlu_roll = (klen % 128 == 0)
    kern = functools.partial(_attn_kernel, scale=scale, use_xlu_roll=use_xlu_roll)
    # TODO(synk): add flash-style k-tiling / masked-tile skipping for qlen >= 1024.
    return pl.pallas_call(
        kern,
        grid=(bsz, H),
        in_specs=[pl.BlockSpec((1, 1, qlen, dh), lambda b, h: (b, h, 0, 0)),
                  pl.BlockSpec((1, 1, klen, dh), lambda b, h: (b, h, 0, 0)),
                  pl.BlockSpec((1, 1, klen, dh), lambda b, h: (b, h, 0, 0)),
                  pl.BlockSpec((1, klen, dh), lambda b, h: (h, 0, 0)),
                  pl.BlockSpec((1, 1, dh), lambda b, h: (h, 0, 0)),
                  pl.BlockSpec((1, 1, dh), lambda b, h: (h, 0, 0))],
        out_specs=pl.BlockSpec((1, 1, qlen, dh), lambda b, h: (b, h, 0, 0)),
        out_shape=jax.ShapeDtypeStruct((bsz, H, qlen, dh), jnp.bfloat16),
        compiler_params=_cparams(("parallel", "parallel"), _VMEM_LIMIT),
    )(q, k, v, rk, r_w_bias, r_r_bias)


def nll_loss(hidden, emb_t_bf16, bias, targets):
    # hidden: (N, d_model) bf16, emb_t_bf16: (d_model, V) bf16 (tied),
    # targets: (N, 1) int32 -> per-token NLL (N, 1) f32
    M, D = hidden.shape
    V = emb_t_bf16.shape[1]
    tm = _pick_tile(M, 512, 8)       # large row tile -> vocab table streamed fewer times
    tv = _pick_tile(V, 1024, 128)
    kern = functools.partial(_nll_kernel, tv=tv)
    return pl.pallas_call(
        kern,
        grid=(M // tm, V // tv),
        in_specs=[pl.BlockSpec((tm, D), lambda i, j: (i, 0)),
                  pl.BlockSpec((D, tv), lambda i, j: (0, j)),
                  pl.BlockSpec((1, tv), lambda i, j: (0, j)),
                  pl.BlockSpec((tm, 1), lambda i, j: (i, 0))],
        out_specs=pl.BlockSpec((tm, 1), lambda i, j: (i, 0)),
        out_shape=jax.ShapeDtypeStruct((M, 1), jnp.float32),
        scratch_shapes=[pltpu.VMEM((tm, 1), jnp.float32),
                        pltpu.VMEM((tm, 1), jnp.float32),
                        pltpu.VMEM((tm, 1), jnp.float32)],
        compiler_params=_cparams(("parallel", "arbitrary"), _VMEM_LIMIT),
    )(hidden, emb_t_bf16, bias, targets)


# ----------------------------------------------------------------------------
# Model (thin plain-JAX glue orchestrating the kernels)
# ----------------------------------------------------------------------------
def decoder_layer(x, pos_emb_bf16, lp, r_w_bias, r_r_bias, n_head, d_head,
                  bsz, qlen):
    # x: (bsz*qlen, d_model) bf16, batch-major rows
    H, dh = n_head, d_head
    klen = pos_emb_bf16.shape[0]

    qkv = matmul(x, lp['qkv_wt'])                       # (bsz*qlen, 3*H*dh) bf16
    # per-(batch, head) contiguous layout for the attention grid
    qkv4 = qkv.reshape(bsz, qlen, 3, H, dh).transpose(2, 0, 3, 1, 4)
    q, k, v = qkv4[0], qkv4[1], qkv4[2]                 # each (bsz, H, qlen, dh)

    rk = matmul(pos_emb_bf16, lp['r_wt'])               # (klen, H*dh) bf16
    rk = rk.reshape(klen, H, dh).transpose(1, 0, 2)     # (H, klen, dh)

    attn = fused_rel_attention(q, k, v, rk,
                               r_w_bias.reshape(H, 1, dh),
                               r_r_bias.reshape(H, 1, dh), dh)
    attn_vec = attn.transpose(0, 2, 1, 3).reshape(bsz * qlen, H * dh)

    # O-projection with fused residual-add + LayerNorm (post-LN)
    out = matmul_add_ln(attn_vec, lp['o_wt'], x, lp['ln1_g'], lp['ln1_b'])
    # FFN with fused residual-add + LayerNorm (post-LN)
    out = ffn_add_ln(out, lp['ff_w1t'], lp['ff_b1'], lp['ff_w2t'], lp['ff_b2'],
                     lp['ln2_g'], lp['ln2_b'])
    return out


def mem_transformer_forward(params, data, target, cfg):
    # data, target: (qlen, bsz) int32.  mem_len == 0 -> mems is None, returns loss.
    assert cfg['mem_len'] == 0 and not cfg['same_length']
    qlen, bsz = data.shape
    d_model = cfg['d_model']
    H = cfg['n_head']
    dh = d_model // H
    mlen = 0
    klen = mlen + qlen
    tgt_len = target.shape[0]

    # AdaptiveEmbedding (single layer, d_proj == d_embed): lookup * sqrt(d_proj)
    # TODO(synk): token-id gather stays as plain JAX (no dense Pallas equivalent).
    emb_scale = d_model ** 0.5
    word_emb = params['emb'][data.T] * emb_scale        # (bsz, qlen, d_model) f32
    x = word_emb.reshape(bsz * qlen, d_model).astype(jnp.bfloat16)

    # PositionalEmbedding on pos_seq = klen-1 .. 0 (clamp_len <= 0)
    pos_seq = jnp.arange(klen - 1, -1, -1, dtype=jnp.float32)
    inv_freq = 1.0 / (10000.0 ** (jnp.arange(0, d_model, 2, dtype=jnp.float32)
                                  / d_model))
    sinusoid = pos_seq[:, None] * inv_freq[None, :]
    pos_emb = jnp.concatenate([jnp.sin(sinusoid), jnp.cos(sinusoid)], axis=-1)
    pos_emb_bf16 = pos_emb.astype(jnp.bfloat16)

    for lp in params['layers']:                         # dropout p = 0
        x = decoder_layer(x, pos_emb_bf16, lp, params['r_w_bias'],
                          params['r_r_bias'], H, dh, bsz, qlen)

    # pred_hid = hidden[-tgt_len:] in the (qlen, bsz, d) view
    hidden = x.reshape(bsz, qlen, d_model)[:, qlen - tgt_len:, :]
    h_flat = hidden.reshape(bsz * tgt_len, d_model)     # bf16
    t_flat = target.T.reshape(bsz * tgt_len, 1).astype(jnp.int32)

    # tied output weights: crit.out_layers[0].weight == word_emb weight
    loss = nll_loss(h_flat, params['emb_t_bf16'], params['crit_bias'], t_flat)
    return loss.reshape(bsz, tgt_len).T                 # (tgt_len, bsz)


# ----------------------------------------------------------------------------
# Deterministic parameter init (weights stored pre-transposed, bf16 for MXU)
# ----------------------------------------------------------------------------
def init_params(key, cfg):
    H = cfg['n_head']
    d_model = cfg['d_model']
    dh = d_model // H
    d_inner = cfg['d_inner']
    n_token = cfg['n_token']
    n_layer = cfg['n_layer']

    def normal(k, shape, std=0.02):
        return std * jax.random.normal(k, shape, dtype=jnp.float32)

    keys = jax.random.split(key, 3 + 5 * n_layer)
    ki = iter(keys)
    emb = normal(next(ki), (n_token, d_model))
    params = {
        'emb': emb,
        'emb_t_bf16': emb.T.astype(jnp.bfloat16),          # tied output weight
        'r_w_bias': normal(next(ki), (H, dh)),
        'r_r_bias': normal(next(ki), (H, dh)),
        'crit_bias': jnp.zeros((1, n_token), jnp.float32),
        'layers': [],
    }
    for _ in range(n_layer):
        params['layers'].append({
            'qkv_wt': normal(next(ki), (d_model, 3 * H * dh)).astype(jnp.bfloat16),
            'r_wt':   normal(next(ki), (d_model, H * dh)).astype(jnp.bfloat16),
            'o_wt':   normal(next(ki), (H * dh, d_model)).astype(jnp.bfloat16),
            'ln1_g': jnp.ones((d_model,), jnp.float32),
            'ln1_b': jnp.zeros((d_model,), jnp.float32),
            'ff_w1t': normal(next(ki), (d_model, d_inner)).astype(jnp.bfloat16),
            'ff_b1': jnp.zeros((1, d_inner), jnp.float32),
            'ff_w2t': normal(next(ki), (d_inner, d_model)).astype(jnp.bfloat16),
            'ff_b2': jnp.zeros((1, d_model), jnp.float32),
            'ln2_g': jnp.ones((d_model,), jnp.float32),
            'ln2_b': jnp.zeros((d_model,), jnp.float32),
        })
    return params


# ----------------------------------------------------------------------------
if __name__ == "__main__":
    cfg = dict(
        n_token=64, n_layer=2, n_head=2, d_model=32, d_embed=32, d_inner=64,
        tgt_len=8, mem_len=0, ext_len=0, clamp_len=-1,
        dropout=0.0, dropatt=0.0, div_val=1,
        tied=True, pre_lnorm=False, same_length=False,
    )
    qlen, bsz = cfg['tgt_len'], 2

    key = jax.random.PRNGKey(0)
    k_param, k_data, k_tgt = jax.random.split(key, 3)
    params = init_params(k_param, cfg)
    data = jax.random.randint(k_data, (qlen, bsz), 0, cfg['n_token'], dtype=jnp.int32)
    target = jax.random.randint(k_tgt, (qlen, bsz), 0, cfg['n_token'], dtype=jnp.int32)

    fwd = jax.jit(lambda p, d, t: mem_transformer_forward(p, d, t, cfg))
    loss = fwd(params, data, target)
    jax.block_until_ready(loss)

    assert loss.shape == (qlen, bsz), loss.shape
    assert bool(jnp.all(jnp.isfinite(loss)))
    print("KERNEL_OK")
</pallas_src>

<mosaic_0001>
module attributes {stable_mosaic.version = 11 : i64} {
  func.func @_matmul_kernel(%arg0: i32, %arg1: i32, %arg2: i32, %arg3: memref<16x32xbf16, #tpu.memory_space<vmem>>, %arg4: memref<32x96xbf16, #tpu.memory_space<vmem>>, %arg5: memref<16x96xbf16, #tpu.memory_space<vmem>>, %arg6: memref<16x96xf32, #tpu.memory_space<vmem>>) attributes {dimension_semantics = [#tpu.dimension_semantics<parallel>, #tpu.dimension_semantics<parallel>, #tpu.dimension_semantics<arbitrary>], iteration_bounds = array<i64: 1, 1, 1>, scalar_prefetch = 0 : i64, scratch_operands = 1 : i64, tpu.core_type = #tpu.core_type<tc>, window_params = [{transform_indices = @transform_0, window_bounds = array<i64: 16, 32>}, {transform_indices = @transform_1, window_bounds = array<i64: 32, 96>}, {transform_indices = @transform_2, window_bounds = array<i64: 16, 96>}]} {
    %c0_i32 = arith.constant 0 : i32
    %0 = arith.cmpi eq, %arg2, %c0_i32 : i32
    %1 = arith.extui %0 : i1 to i32
    %c0_i32_0 = arith.constant 0 : i32
    %2 = arith.cmpi ne, %1, %c0_i32_0 : i32
    scf.if %2 {
      %cst_10 = arith.constant 0.000000e+00 : f32
      %12 = vector.broadcast %cst_10 : f32 to vector<16x96xf32>
      %c0_11 = arith.constant 0 : index
      %c0_12 = arith.constant 0 : index
      %13 = vector.load %arg6[%c0_11, %c0_12] : memref<16x96xf32, #tpu.memory_space<vmem>>, vector<16x96xf32>
      tpu.vector_store %arg6[%c0_11, %c0_12], %12 {strides = array<i32>} : memref<16x96xf32, #tpu.memory_space<vmem>>, vector<16x96xf32>,
    } else {
    }
    %c0 = arith.constant 0 : index
    %c0_1 = arith.constant 0 : index
    %3 = vector.load %arg6[%c0, %c0_1] : memref<16x96xf32, #tpu.memory_space<vmem>>, vector<16x96xf32>
    %c0_2 = arith.constant 0 : index
    %c0_3 = arith.constant 0 : index
    %4 = vector.load %arg3[%c0_2, %c0_3] : memref<16x32xbf16, #tpu.memory_space<vmem>>, vector<16x32xbf16>
    %c0_4 = arith.constant 0 : index
    %c0_5 = arith.constant 0 : index
    %5 = vector.load %arg4[%c0_4, %c0_5] : memref<32x96xbf16, #tpu.memory_space<vmem>>, vector<32x96xbf16>
    %cst = arith.constant dense<0.000000e+00> : vector<16x96xf32>
    %6 = tpu.matmul %4, %5, %cst {dimension_numbers = #tpu.dot_dimension_numbers<[1], [0], [0], [1], [0, 0, 1, 1], [], []>} : vector<16x32xbf16>, vector<32x96xbf16>, vector<16x96xf32> -> vector<16x96xf32>
    %7 = arith.addf %3, %6 : vector<16x96xf32>
    %c0_6 = arith.constant 0 : index
    %c0_7 = arith.constant 0 : index
    %8 = vector.load %arg6[%c0_6, %c0_7] : memref<16x96xf32, #tpu.memory_space<vmem>>, vector<16x96xf32>
    tpu.vector_store %arg6[%c0_6, %c0_7], %7 {strides = array<i32>} : memref<16x96xf32, #tpu.memory_space<vmem>>, vector<16x96xf32>,
    %c0_i32_8 = arith.constant 0 : i32
    %9 = arith.cmpi eq, %arg2, %c0_i32_8 : i32
    %10 = arith.extui %9 : i1 to i32
    %c0_i32_9 = arith.constant 0 : i32
    %11 = arith.cmpi ne, %10, %c0_i32_9 : i32
    scf.if %11 {
      %c0_10 = arith.constant 0 : index
      %c0_11 = arith.constant 0 : index
      %12 = vector.load %arg6[%c0_10, %c0_11] : memref<16x96xf32, #tpu.memory_space<vmem>>, vector<16x96xf32>
      %13 = arith.truncf %12 : vector<16x96xf32> to vector<16x96xbf16>
      %c0_12 = arith.constant 0 : index
      %c0_13 = arith.constant 0 : index
      %14 = vector.load %arg5[%c0_12, %c0_13] : memref<16x96xbf16, #tpu.memory_space<vmem>>, vector<16x96xbf16>
      tpu.vector_store %arg5[%c0_12, %c0_13], %13 {strides = array<i32>} : memref<16x96xbf16, #tpu.memory_space<vmem>>, vector<16x96xbf16>,
    } else {
    }
    return
  }
  func.func @transform_0(%arg0: i32, %arg1: i32, %arg2: i32) -> (i32, i32) {
    %c0_i32 = arith.constant 0 : i32
    return %arg0, %arg2 : i32, i32
  }
  func.func @transform_1(%arg0: i32, %arg1: i32, %arg2: i32) -> (i32, i32) {
    %c0_i32 = arith.constant 0 : i32
    return %arg2, %arg1 : i32, i32
  }
  func.func @transform_2(%arg0: i32, %arg1: i32, %arg2: i32) -> (i32, i32) {
    %c0_i32 = arith.constant 0 : i32
    return %arg0, %arg1 : i32, i32
  }
}

module attributes {stable_mosaic.version = 11 : i64} {
  func.func @_matmul_kernel(%arg0: i32, %arg1: i32, %arg2: i32, %arg3: memref<8x32xbf16, #tpu.memory_space<vmem>>, %arg4: memref<32x32xbf16, #tpu.memory_space<vmem>>, %arg5: memref<8x32xbf16, #tpu.memory_space<vmem>>, %arg6: memref<8x32xf32, #tpu.memory_space<vmem>>) attributes {dimension_semantics = [#tpu.dimension_semantics<parallel>, #tpu.dimension_semantics<parallel>, #tpu.dimension_semantics<arbitrary>], iteration_bounds = array<i64: 1, 1, 1>, scalar_prefetch = 0 : i64, scratch_operands = 1 : i64, tpu.core_type = #tpu.core_type<tc>, window_params = [{transform_indices = @transform_0, window_bounds = array<i64: 8, 32>}, {transform_indices = @transform_1, window_bounds = array<i64: 32, 32>}, {transform_indices = @transform_2, window_bounds = array<i64: 8, 32>}]} {
    %c0_i32 = arith.constant 0 : i32
    %0 = arith.cmpi eq, %arg2, %c0_i32 : i32
    %1 = arith.extui %0 : i1 to i32
    %c0_i32_0 = arith.constant 0 : i32
    %2 = arith.cmpi ne, %1, %c0_i32_0 : i32
    scf.if %2 {
      %cst_10 = arith.constant 0.000000e+00 : f32
      %12 = vector.broadcast %cst_10 : f32 to vector<8x32xf32>
      %c0_11 = arith.constant 0 : index
      %c0_12 = arith.constant 0 : index
      %13 = vector.load %arg6[%c0_11, %c0_12] : memref<8x32xf32, #tpu.memory_space<vmem>>, vector<8x32xf32>
      tpu.vector_store %arg6[%c0_11, %c0_12], %12 {strides = array<i32>} : memref<8x32xf32, #tpu.memory_space<vmem>>, vector<8x32xf32>,
    } else {
    }
    %c0 = arith.constant 0 : index
    %c0_1 = arith.constant 0 : index
    %3 = vector.load %arg6[%c0, %c0_1] : memref<8x32xf32, #tpu.memory_space<vmem>>, vector<8x32xf32>
    %c0_2 = arith.constant 0 : index
    %c0_3 = arith.constant 0 : index
    %4 = vector.load %arg3[%c0_2, %c0_3] : memref<8x32xbf16, #tpu.memory_space<vmem>>, vector<8x32xbf16>
    %c0_4 = arith.constant 0 : index
    %c0_5 = arith.constant 0 : index
    %5 = vector.load %arg4[%c0_4, %c0_5] : memref<32x32xbf16, #tpu.memory_space<vmem>>, vector<32x32xbf16>
    %cst = arith.constant dense<0.000000e+00> : vector<8x32xf32>
    %6 = tpu.matmul %4, %5, %cst {dimension_numbers = #tpu.dot_dimension_numbers<[1], [0], [0], [1], [0, 0, 1, 1], [], []>} : vector<8x32xbf16>, vector<32x32xbf16>, vector<8x32xf32> -> vector<8x32xf32>
    %7 = arith.addf %3, %6 : vector<8x32xf32>
    %c0_6 = arith.constant 0 : index
    %c0_7 = arith.constant 0 : index
    %8 = vector.load %arg6[%c0_6, %c0_7] : memref<8x32xf32, #tpu.memory_space<vmem>>, vector<8x32xf32>
    tpu.vector_store %arg6[%c0_6, %c0_7], %7 {strides = array<i32>} : memref<8x32xf32, #tpu.memory_space<vmem>>, vector<8x32xf32>,
    %c0_i32_8 = arith.constant 0 : i32
    %9 = arith.cmpi eq, %arg2, %c0_i32_8 : i32
    %10 = arith.extui %9 : i1 to i32
    %c0_i32_9 = arith.constant 0 : i32
    %11 = arith.cmpi ne, %10, %c0_i32_9 : i32
    scf.if %11 {
      %c0_10 = arith.constant 0 : index
      %c0_11 = arith.constant 0 : index
      %12 = vector.load %arg6[%c0_10, %c0_11] : memref<8x32xf32, #tpu.memory_space<vmem>>, vector<8x32xf32>
      %13 = arith.truncf %12 : vector<8x32xf32> to vector<8x32xbf16>
      %c0_12 = arith.constant 0 : index
      %c0_13 = arith.constant 0 : index
      %14 = vector.load %arg5[%c0_12, %c0_13] : memref<8x32xbf16, #tpu.memory_space<vmem>>, vector<8x32xbf16>
      tpu.vector_store %arg5[%c0_12, %c0_13], %13 {strides = array<i32>} : memref<8x32xbf16, #tpu.memory_space<vmem>>, vector<8x32xbf16>,
    } else {
    }
    return
  }
  func.func @transform_0(%arg0: i32, %arg1: i32, %arg2: i32) -> (i32, i32) {
    %c0_i32 = arith.constant 0 : i32
    return %arg0, %arg2 : i32, i32
  }
  func.func @transform_1(%arg0: i32, %arg1: i32, %arg2: i32) -> (i32, i32) {
    %c0_i32 = arith.constant 0 : i32
    return %arg2, %arg1 : i32, i32
  }
  func.func @transform_2(%arg0: i32, %arg1: i32, %arg2: i32) -> (i32, i32) {
    %c0_i32 = arith.constant 0 : i32
    return %arg0, %arg1 : i32, i32
  }
}

module attributes {stable_mosaic.version = 11 : i64} {
  func.func @_attn_kernel(%arg0: i32, %arg1: i32, %arg2: memref<1x1x8x16xbf16, #tpu.memory_space<vmem>>, %arg3: memref<1x1x8x16xbf16, #tpu.memory_space<vmem>>, %arg4: memref<1x1x8x16xbf16, #tpu.memory_space<vmem>>, %arg5: memref<1x8x16xbf16, #tpu.memory_space<vmem>>, %arg6: memref<1x1x16xf32, #tpu.memory_space<vmem>>, %arg7: memref<1x1x16xf32, #tpu.memory_space<vmem>>, %arg8: memref<1x1x8x16xbf16, #tpu.memory_space<vmem>>) attributes {dimension_semantics = [#tpu.dimension_semantics<parallel>, #tpu.dimension_semantics<parallel>], iteration_bounds = array<i64: 2, 2>, scalar_prefetch = 0 : i64, scratch_operands = 0 : i64, tpu.core_type = #tpu.core_type<tc>, window_params = [{transform_indices = @transform_0, window_bounds = array<i64: 1, 1, 8, 16>}, {transform_indices = @transform_1, window_bounds = array<i64: 1, 1, 8, 16>}, {transform_indices = @transform_2, window_bounds = array<i64: 1, 1, 8, 16>}, {transform_indices = @transform_3, window_bounds = array<i64: 1, 8, 16>}, {transform_indices = @transform_4, window_bounds = array<i64: 1, 1, 16>}, {transform_indices = @transform_5, window_bounds = array<i64: 1, 1, 16>}, {transform_indices = @transform_6, window_bounds = array<i64: 1, 1, 8, 16>}]} {
    %c0 = arith.constant 0 : index
    %c0_0 = arith.constant 0 : index
    %c0_1 = arith.constant 0 : index
    %c0_2 = arith.constant 0 : index
    %0 = vector.load %arg2[%c0, %c0_0, %c0_1, %c0_2] : memref<1x1x8x16xbf16, #tpu.memory_space<vmem>>, vector<1x1x8x16xbf16>
    %1 = vector.shape_cast %0 : vector<1x1x8x16xbf16> to vector<8x16xbf16>
    %2 = arith.extf %1 : vector<8x16xbf16> to vector<8x16xf32>
    %c0_3 = arith.constant 0 : index
    %c0_4 = arith.constant 0 : index
    %c0_5 = arith.constant 0 : index
    %c0_6 = arith.constant 0 : index
    %3 = vector.load %arg3[%c0_3, %c0_4, %c0_5, %c0_6] : memref<1x1x8x16xbf16, #tpu.memory_space<vmem>>, vector<1x1x8x16xbf16>
    %4 = vector.shape_cast %3 : vector<1x1x8x16xbf16> to vector<8x16xbf16>
    %c0_7 = arith.constant 0 : index
    %c0_8 = arith.constant 0 : index
    %c0_9 = arith.constant 0 : index
    %c0_10 = arith.constant 0 : index
    %5 = vector.load %arg4[%c0_7, %c0_8, %c0_9, %c0_10] : memref<1x1x8x16xbf16, #tpu.memory_space<vmem>>, vector<1x1x8x16xbf16>
    %6 = vector.shape_cast %5 : vector<1x1x8x16xbf16> to vector<8x16xbf16>
    %c0_11 = arith.constant 0 : index
    %c0_12 = arith.constant 0 : index
    %c0_13 = arith.constant 0 : index
    %7 = vector.load %arg5[%c0_11, %c0_12, %c0_13] : memref<1x8x16xbf16, #tpu.memory_space<vmem>>, vector<1x8x16xbf16>
    %8 = vector.shape_cast %7 : vector<1x8x16xbf16> to vector<8x16xbf16>
    %c0_14 = arith.constant 0 : index
    %c0_15 = arith.constant 0 : index
    %c0_16 = arith.constant 0 : index
    %9 = vector.load %arg6[%c0_14, %c0_15, %c0_16] : memref<1x1x16xf32, #tpu.memory_space<vmem>>, vector<1x1x16xf32>
    %10 = vector.shape_cast %9 : vector<1x1x16xf32> to vector<1x16xf32>
    %11 = vector.broadcast %10 : vector<1x16xf32> to vector<8x16xf32>
    %12 = arith.addf %2, %11 : vector<8x16xf32>
    %13 = arith.truncf %12 : vector<8x16xf32> to vector<8x16xbf16>
    %c0_17 = arith.constant 0 : index
    %c0_18 = arith.constant 0 : index
    %c0_19 = arith.constant 0 : index
    %14 = vector.load %arg7[%c0_17, %c0_18, %c0_19] : memref<1x1x16xf32, #tpu.memory_space<vmem>>, vector<1x1x16xf32>
    %15 = vector.shape_cast %14 : vector<1x1x16xf32> to vector<1x16xf32>
    %16 = vector.broadcast %15 : vector<1x16xf32> to vector<8x16xf32>
    %17 = arith.addf %2, %16 : vector<8x16xf32>
    %18 = arith.truncf %17 : vector<8x16xf32> to vector<8x16xbf16>
    %cst = arith.constant dense<0.000000e+00> : vector<8x8xf32>
    %19 = tpu.matmul %13, %4, %cst {dimension_numbers = #tpu.dot_dimension_numbers<[1], [1], [0], [0], [0, 0, 1, 0], [], []>} : vector<8x16xbf16>, vector<8x16xbf16>, vector<8x8xf32> -> vector<8x8xf32>
    %cst_20 = arith.constant dense<0.000000e+00> : vector<8x8xf32>
    %20 = tpu.matmul %18, %8, %cst_20 {dimension_numbers = #tpu.dot_dimension_numbers<[1], [1], [0], [0], [0, 0, 1, 0], [], []>} : vector<8x16xbf16>, vector<8x16xbf16>, vector<8x8xf32> -> vector<8x8xf32>
    %21 = tpu.iota {dimensions = array<i32: 0>} : vector<8x1xi32>
    %22 = vector.extract_strided_slice %20 {offsets = [0, 7], sizes = [8, 1], strides = [1, 1]} : vector<8x8xf32> to vector<8x1xf32>
    %23 = vector.extract_strided_slice %20 {offsets = [0, 0], sizes = [8, 7], strides = [1, 1]} : vector<8x8xf32> to vector<8x7xf32>
    %24 = tpu.concatenate %22, %23 in 1 : vector<8x1xf32>, vector<8x7xf32> -> vector<8x8xf32>
    %25 = vector.extract_strided_slice %24 {offsets = [0, 7], sizes = [8, 1], strides = [1, 1]} : vector<8x8xf32> to vector<8x1xf32>
    %26 = vector.extract_strided_slice %24 {offsets = [0, 0], sizes = [8, 7], strides = [1, 1]} : vector<8x8xf32> to vector<8x7xf32>
    %27 = tpu.concatenate %25, %26 in 1 : vector<8x1xf32>, vector<8x7xf32> -> vector<8x8xf32>
    %c0_i32 = arith.constant 0 : i32
    %28 = vector.broadcast %c0_i32 : i32 to vector<8x1xi32>
    %29 = arith.shrsi %21, %28 : vector<8x1xi32>
    %c1_i32 = arith.constant 1 : i32
    %30 = vector.broadcast %c1_i32 : i32 to vector<8x1xi32>
    %31 = arith.andi %29, %30 : vector<8x1xi32>
    %c1_i32_21 = arith.constant 1 : i32
    %32 = vector.broadcast %c1_i32_21 : i32 to vector<8x1xi32>
    %33 = arith.cmpi eq, %31, %32 : vector<8x1xi32>
    %34 = vector.shape_cast %33 : vector<8x1xi1> to vector<8x1xi1>
    %35 = vector.broadcast %34 : vector<8x1xi1> to vector<8x8xi1>
    %36 = arith.select %35, %27, %24 : vector<8x8xi1>, vector<8x8xf32>
    %37 = vector.extract_strided_slice %36 {offsets = [0, 6], sizes = [8, 2], strides = [1, 1]} : vector<8x8xf32> to vector<8x2xf32>
    %38 = vector.extract_strided_slice %36 {offsets = [0, 0], sizes = [8, 6], strides = [1, 1]} : vector<8x8xf32> to vector<8x6xf32>
    %39 = tpu.concatenate %37, %38 in 1 : vector<8x2xf32>, vector<8x6xf32> -> vector<8x8xf32>
    %c1_i32_22 = arith.constant 1 : i32
    %40 = vector.broadcast %c1_i32_22 : i32 to vector<8x1xi32>
    %41 = arith.shrsi %21, %40 : vector<8x1xi32>
    %c1_i32_23 = arith.constant 1 : i32
    %42 = vector.broadcast %c1_i32_23 : i32 to vector<8x1xi32>
    %43 = arith.andi %41, %42 : vector<8x1xi32>
    %c1_i32_24 = arith.constant 1 : i32
    %44 = vector.broadcast %c1_i32_24 : i32 to vector<8x1xi32>
    %45 = arith.cmpi eq, %43, %44 : vector<8x1xi32>
    %46 = vector.shape_cast %45 : vector<8x1xi1> to vector<8x1xi1>
    %47 = vector.broadcast %46 : vector<8x1xi1> to vector<8x8xi1>
    %48 = arith.select %47, %39, %36 : vector<8x8xi1>, vector<8x8xf32>
    %49 = vector.extract_strided_slice %48 {offsets = [0, 4], sizes = [8, 4], strides = [1, 1]} : vector<8x8xf32> to vector<8x4xf32>
    %50 = vector.extract_strided_slice %48 {offsets = [0, 0], sizes = [8, 4], strides = [1, 1]} : vector<8x8xf32> to vector<8x4xf32>
    %51 = tpu.concatenate %49, %50 in 1 : vector<8x4xf32>, vector<8x4xf32> -> vector<8x8xf32>
    %c2_i32 = arith.constant 2 : i32
    %52 = vector.broadcast %c2_i32 : i32 to vector<8x1xi32>
    %53 = arith.shrsi %21, %52 : vector<8x1xi32>
    %c1_i32_25 = arith.constant 1 : i32
    %54 = vector.broadcast %c1_i32_25 : i32 to vector<8x1xi32>
    %55 = arith.andi %53, %54 : vector<8x1xi32>
    %c1_i32_26 = arith.constant 1 : i32
    %56 = vector.broadcast %c1_i32_26 : i32 to vector<8x1xi32>
    %57 = arith.cmpi eq, %55, %56 : vector<8x1xi32>
    %58 = vector.shape_cast %57 : vector<8x1xi1> to vector<8x1xi1>
    %59 = vector.broadcast %58 : vector<8x1xi1> to vector<8x8xi1>
    %60 = arith.select %59, %51, %48 : vector<8x8xi1>, vector<8x8xf32>
    %61 = arith.addf %19, %60 : vector<8x8xf32>
    %cst_27 = arith.constant 2.500000e-01 : f32
    %62 = vector.broadcast %cst_27 : f32 to vector<8x8xf32>
    %63 = arith.mulf %61, %62 : vector<8x8xf32>
    %64 = tpu.iota {dimensions = array<i32: 1>} : vector<8x8xi32>
    %65 = tpu.iota {dimensions = array<i32: 0>} : vector<8x8xi32>
    %66 = arith.cmpi sgt, %64, %65 : vector<8x8xi32>
    %cst_28 = arith.constant -1.000000e+30 : f32
    %67 = vector.broadcast %cst_28 : f32 to vector<8x8xf32>
    %68 = arith.select %66, %67, %63 : vector<8x8xi1>, vector<8x8xf32>
    %cst_29 = arith.constant dense<0xFF800000> : vector<8xf32>
    %69 = vector.multi_reduction <maximumf>, %68, %cst_29 [1] : vector<8x8xf32> to vector<8xf32>
    %70 = vector.shape_cast %69 : vector<8xf32> to vector<8x1xf32>
    %71 = vector.broadcast %70 : vector<8x1xf32> to vector<8x8xf32>
    %72 = arith.subf %68, %71 : vector<8x8xf32>
    %73 = math.exp %72 : vector<8x8xf32>
    %cst_30 = arith.constant dense<0.000000e+00> : vector<8xf32>
    %74 = vector.multi_reduction <add>, %73, %cst_30 [1] : vector<8x8xf32> to vector<8xf32>
    %75 = vector.shape_cast %74 : vector<8xf32> to vector<8x1xf32>
    %76 = tpu.reciprocal %75 {approx = true} : vector<8x1xf32> -> vector<8x1xf32>
    %77 = vector.broadcast %76 : vector<8x1xf32> to vector<8x8xf32>
    %78 = arith.mulf %73, %77 : vector<8x8xf32>
    %79 = arith.truncf %78 : vector<8x8xf32> to vector<8x8xbf16>
    %cst_31 = arith.constant dense<0.000000e+00> : vector<8x16xf32>
    %80 = tpu.matmul %79, %6, %cst_31 {dimension_numbers = #tpu.dot_dimension_numbers<[1], [0], [0], [1], [0, 0, 1, 1], [], []>} : vector<8x8xbf16>, vector<8x16xbf16>, vector<8x16xf32> -> vector<8x16xf32>
    %81 = arith.truncf %80 : vector<8x16xf32> to vector<8x16xbf16>
    %c0_32 = arith.constant 0 : index
    %c0_33 = arith.constant 0 : index
    %c0_34 = arith.constant 0 : index
    %c0_35 = arith.constant 0 : index
    %82 = vector.load %arg8[%c0_32, %c0_33, %c0_34, %c0_35] : memref<1x1x8x16xbf16, #tpu.memory_space<vmem>>, vector<1x1x8x16xbf16>
    %83 = vector.shape_cast %82 : vector<1x1x8x16xbf16> to vector<8x16xbf16>
    %84 = vector.shape_cast %81 : vector<8x16xbf16> to vector<1x1x8x16xbf16>
    tpu.vector_store %arg8[%c0_32, %c0_33, %c0_34, %c0_35], %84 {strides = array<i32>} : memref<1x1x8x16xbf16, #tpu.memory_space<vmem>>, vector<1x1x8x16xbf16>,
    return
  }
  func.func @transform_0(%arg0: i32, %arg1: i32) -> (i32, i32, i32, i32) {
    %c0_i32 = arith.constant 0 : i32
    %c0_i32_0 = arith.constant 0 : i32
    %c0_i32_1 = arith.constant 0 : i32
    return %arg0, %arg1, %c0_i32, %c0_i32_0 : i32, i32, i32, i32
  }
  func.func @transform_1(%arg0: i32, %arg1: i32) -> (i32, i32, i32, i32) {
    %c0_i32 = arith.constant 0 : i32
    %c0_i32_0 = arith.constant 0 : i32
    %c0_i32_1 = arith.constant 0 : i32
    return %arg0, %arg1, %c0_i32, %c0_i32_0 : i32, i32, i32, i32
  }
  func.func @transform_2(%arg0: i32, %arg1: i32) -> (i32, i32, i32, i32) {
    %c0_i32 = arith.constant 0 : i32
    %c0_i32_0 = arith.constant 0 : i32
    %c0_i32_1 = arith.constant 0 : i32
    return %arg0, %arg1, %c0_i32, %c0_i32_0 : i32, i32, i32, i32
  }
  func.func @transform_3(%arg0: i32, %arg1: i32) -> (i32, i32, i32) {
    %c0_i32 = arith.constant 0 : i32
    %c0_i32_0 = arith.constant 0 : i32
    %c0_i32_1 = arith.constant 0 : i32
    return %arg1, %c0_i32, %c0_i32_0 : i32, i32, i32
  }
  func.func @transform_4(%arg0: i32, %arg1: i32) -> (i32, i32, i32) {
    %c0_i32 = arith.constant 0 : i32
    %c0_i32_0 = arith.constant 0 : i32
    %c0_i32_1 = arith.constant 0 : i32
    return %arg1, %c0_i32, %c0_i32_0 : i32, i32, i32
  }
  func.func @transform_5(%arg0: i32, %arg1: i32) -> (i32, i32, i32) {
    %c0_i32 = arith.constant 0 : i32
    %c0_i32_0 = arith.constant 0 : i32
    %c0_i32_1 = arith.constant 0 : i32
    return %arg1, %c0_i32, %c0_i32_0 : i32, i32, i32
  }
  func.func @transform_6(%arg0: i32, %arg1: i32) -> (i32, i32, i32, i32) {
    %c0_i32 = arith.constant 0 : i32
    %c0_i32_0 = arith.constant 0 : i32
    %c0_i32_1 = arith.constant 0 : i32
    return %arg0, %arg1, %c0_i32, %c0_i32_0 : i32, i32, i32, i32
  }
}

module attributes {stable_mosaic.version = 11 : i64} {
  func.func @_matmul_add_ln_kernel(%arg0: i32, %arg1: i32, %arg2: memref<16x32xbf16, #tpu.memory_space<vmem>>, %arg3: memref<32x32xbf16, #tpu.memory_space<vmem>>, %arg4: memref<16x32xbf16, #tpu.memory_space<vmem>>, %arg5: memref<1x32xf32, #tpu.memory_space<vmem>>, %arg6: memref<1x32xf32, #tpu.memory_space<vmem>>, %arg7: memref<16x32xbf16, #tpu.memory_space<vmem>>, %arg8: memref<16x32xf32, #tpu.memory_space<vmem>>) attributes {dimension_semantics = [#tpu.dimension_semantics<parallel>, #tpu.dimension_semantics<arbitrary>], iteration_bounds = array<i64: 1, 1>, scalar_prefetch = 0 : i64, scratch_operands = 1 : i64, tpu.core_type = #tpu.core_type<tc>, window_params = [{transform_indices = @transform_0, window_bounds = array<i64: 16, 32>}, {transform_indices = @transform_1, window_bounds = array<i64: 32, 32>}, {transform_indices = @transform_2, window_bounds = array<i64: 16, 32>}, {pipeline_mode = #tpu.pipeline_mode<synchronous>, transform_indices = @transform_3, window_bounds = array<i64: 1, 32>}, {pipeline_mode = #tpu.pipeline_mode<synchronous>, transform_indices = @transform_4, window_bounds = array<i64: 1, 32>}, {transform_indices = @transform_5, window_bounds = array<i64: 16, 32>}]} {
    %c0_i32 = arith.constant 0 : i32
    %0 = arith.cmpi eq, %arg1, %c0_i32 : i32
    %1 = arith.extui %0 : i1 to i32
    %c0_i32_0 = arith.constant 0 : i32
    %2 = arith.cmpi ne, %1, %c0_i32_0 : i32
    scf.if %2 {
      %cst_10 = arith.constant 0.000000e+00 : f32
      %12 = vector.broadcast %cst_10 : f32 to vector<16x32xf32>
      %c0_11 = arith.constant 0 : index
      %c0_12 = arith.constant 0 : index
      %13 = vector.load %arg8[%c0_11, %c0_12] : memref<16x32xf32, #tpu.memory_space<vmem>>, vector<16x32xf32>
      tpu.vector_store %arg8[%c0_11, %c0_12], %12 {strides = array<i32>} : memref<16x32xf32, #tpu.memory_space<vmem>>, vector<16x32xf32>,
    } else {
    }
    %c0 = arith.constant 0 : index
    %c0_1 = arith.constant 0 : index
    %3 = vector.load %arg8[%c0, %c0_1] : memref<16x32xf32, #tpu.memory_space<vmem>>, vector<16x32xf32>
    %c0_2 = arith.constant 0 : index
    %c0_3 = arith.constant 0 : index
    %4 = vector.load %arg2[%c0_2, %c0_3] : memref<16x32xbf16, #tpu.memory_space<vmem>>, vector<16x32xbf16>
    %c0_4 = arith.constant 0 : index
    %c0_5 = arith.constant 0 : index
    %5 = vector.load %arg3[%c0_4, %c0_5] : memref<32x32xbf16, #tpu.memory_space<vmem>>, vector<32x32xbf16>
    %cst = arith.constant dense<0.000000e+00> : vector<16x32xf32>
    %6 = tpu.matmul %4, %5, %cst {dimension_numbers = #tpu.dot_dimension_numbers<[1], [0], [0], [1], [0, 0, 1, 1], [], []>} : vector<16x32xbf16>, vector<32x32xbf16>, vector<16x32xf32> -> vector<16x32xf32>
    %7 = arith.addf %3, %6 : vector<16x32xf32>
    %c0_6 = arith.constant 0 : index
    %c0_7 = arith.constant 0 : index
    %8 = vector.load %arg8[%c0_6, %c0_7] : memref<16x32xf32, #tpu.memory_space<vmem>>, vector<16x32xf32>
    tpu.vector_store %arg8[%c0_6, %c0_7], %7 {strides = array<i32>} : memref<16x32xf32, #tpu.memory_space<vmem>>, vector<16x32xf32>,
    %c0_i32_8 = arith.constant 0 : i32
    %9 = arith.cmpi eq, %arg1, %c0_i32_8 : i32
    %10 = arith.extui %9 : i1 to i32
    %c0_i32_9 = arith.constant 0 : i32
    %11 = arith.cmpi ne, %10, %c0_i32_9 : i32
    scf.if %11 {
      %c0_10 = arith.constant 0 : index
      %c0_11 = arith.constant 0 : index
      %12 = vector.load %arg8[%c0_10, %c0_11] : memref<16x32xf32, #tpu.memory_space<vmem>>, vector<16x32xf32>
      %c0_12 = arith.constant 0 : index
      %c0_13 = arith.constant 0 : index
      %13 = vector.load %arg4[%c0_12, %c0_13] : memref<16x32xbf16, #tpu.memory_space<vmem>>, vector<16x32xbf16>
      %14 = arith.extf %13 : vector<16x32xbf16> to vector<16x32xf32>
      %15 = arith.addf %12, %14 : vector<16x32xf32>
      %cst_14 = arith.constant dense<0.000000e+00> : vector<16xf32>
      %16 = vector.multi_reduction <add>, %15, %cst_14 [1] : vector<16x32xf32> to vector<16xf32>
      %17 = vector.shape_cast %16 : vector<16xf32> to vector<16x1xf32>
      %cst_15 = arith.constant 3.200000e+01 : f32
      %18 = vector.broadcast %cst_15 : f32 to vector<16x1xf32>
      %19 = arith.divf %17, %18 : vector<16x1xf32>
      %20 = vector.broadcast %19 : vector<16x1xf32> to vector<16x32xf32>
      %21 = arith.subf %15, %20 : vector<16x32xf32>
      %22 = arith.mulf %21, %21 : vector<16x32xf32>
      %cst_16 = arith.constant dense<0.000000e+00> : vector<16xf32>
      %23 = vector.multi_reduction <add>, %22, %cst_16 [1] : vector<16x32xf32> to vector<16xf32>
      %24 = vector.shape_cast %23 : vector<16xf32> to vector<16x1xf32>
      %cst_17 = arith.constant 3.200000e+01 : f32
      %25 = vector.broadcast %cst_17 : f32 to vector<16x1xf32>
      %26 = arith.divf %24, %25 : vector<16x1xf32>
      %cst_18 = arith.constant 9.99999974E-6 : f32
      %27 = vector.broadcast %cst_18 : f32 to vector<16x1xf32>
      %28 = arith.addf %26, %27 : vector<16x1xf32>
      %29 = math.rsqrt %28 : vector<16x1xf32>
      %30 = vector.broadcast %29 : vector<16x1xf32> to vector<16x32xf32>
      %31 = arith.mulf %21, %30 : vector<16x32xf32>
      %c0_19 = arith.constant 0 : index
      %c0_20 = arith.constant 0 : index
      %32 = vector.load %arg5[%c0_19, %c0_20] : memref<1x32xf32, #tpu.memory_space<vmem>>, vector<1x32xf32>
      %33 = vector.broadcast %32 : vector<1x32xf32> to vector<16x32xf32>
      %34 = arith.mulf %31, %33 : vector<16x32xf32>
      %c0_21 = arith.constant 0 : index
      %c0_22 = arith.constant 0 : index
      %35 = vector.load %arg6[%c0_21, %c0_22] : memref<1x32xf32, #tpu.memory_space<vmem>>, vector<1x32xf32>
      %36 = vector.broadcast %35 : vector<1x32xf32> to vector<16x32xf32>
      %37 = arith.addf %34, %36 : vector<16x32xf32>
      %38 = arith.truncf %37 : vector<16x32xf32> to vector<16x32xbf16>
      %c0_23 = arith.constant 0 : index
      %c0_24 = arith.constant 0 : index
      %39 = vector.load %arg7[%c0_23, %c0_24] : memref<16x32xbf16, #tpu.memory_space<vmem>>, vector<16x32xbf16>
      tpu.vector_store %arg7[%c0_23, %c0_24], %38 {strides = array<i32>} : memref<16x32xbf16, #tpu.memory_space<vmem>>, vector<16x32xbf16>,
    } else {
    }
    return
  }
  func.func @transform_0(%arg0: i32, %arg1: i32) -> (i32, i32) {
    %c0_i32 = arith.constant 0 : i32
    return %arg0, %arg1 : i32, i32
  }
  func.func @transform_1(%arg0: i32, %arg1: i32) -> (i32, i32) {
    %c0_i32 = arith.constant 0 : i32
    %c0_i32_0 = arith.constant 0 : i32
    return %arg1, %c0_i32 : i32, i32
  }
  func.func @transform_2(%arg0: i32, %arg1: i32) -> (i32, i32) {
    %c0_i32 = arith.constant 0 : i32
    %c0_i32_0 = arith.constant 0 : i32
    return %arg0, %c0_i32 : i32, i32
  }
  func.func @transform_3(%arg0: i32, %arg1: i32) -> (i32, i32) {
    %c0_i32 = arith.constant 0 : i32
    %c0_i32_0 = arith.constant 0 : i32
    %c0_i32_1 = arith.constant 0 : i32
    return %c0_i32, %c0_i32_0 : i32, i32
  }
  func.func @transform_4(%arg0: i32, %arg1: i32) -> (i32, i32) {
    %c0_i32 = arith.constant 0 : i32
    %c0_i32_0 = arith.constant 0 : i32
    %c0_i32_1 = arith.constant 0 : i32
    return %c0_i32, %c0_i32_0 : i32, i32
  }
  func.func @transform_5(%arg0: i32, %arg1: i32) -> (i32, i32) {
    %c0_i32 = arith.constant 0 : i32
    %c0_i32_0 = arith.constant 0 : i32
    return %arg0, %c0_i32 : i32, i32
  }
}

module attributes {stable_mosaic.version = 11 : i64} {
  func.func @_ffn_add_ln_kernel(%arg0: i32, %arg1: i32, %arg2: memref<16x32xbf16, #tpu.memory_space<vmem>>, %arg3: memref<32x64xbf16, #tpu.memory_space<vmem>>, %arg4: memref<1x64xf32, #tpu.memory_space<vmem>>, %arg5: memref<64x32xbf16, #tpu.memory_space<vmem>>, %arg6: memref<1x32xf32, #tpu.memory_space<vmem>>, %arg7: memref<1x32xf32, #tpu.memory_space<vmem>>, %arg8: memref<1x32xf32, #tpu.memory_space<vmem>>, %arg9: memref<16x32xbf16, #tpu.memory_space<vmem>>, %arg10: memref<16x32xf32, #tpu.memory_space<vmem>>) attributes {dimension_semantics = [#tpu.dimension_semantics<parallel>, #tpu.dimension_semantics<arbitrary>], iteration_bounds = array<i64: 1, 1>, scalar_prefetch = 0 : i64, scratch_operands = 1 : i64, tpu.core_type = #tpu.core_type<tc>, window_params = [{transform_indices = @transform_0, window_bounds = array<i64: 16, 32>}, {transform_indices = @transform_1, window_bounds = array<i64: 32, 64>}, {transform_indices = @transform_2, window_bounds = array<i64: 1, 64>}, {transform_indices = @transform_3, window_bounds = array<i64: 64, 32>}, {pipeline_mode = #tpu.pipeline_mode<synchronous>, transform_indices = @transform_4, window_bounds = array<i64: 1, 32>}, {pipeline_mode = #tpu.pipeline_mode<synchronous>, transform_indices = @transform_5, window_bounds = array<i64: 1, 32>}, {pipeline_mode = #tpu.pipeline_mode<synchronous>, transform_indices = @transform_6, window_bounds = array<i64: 1, 32>}, {transform_indices = @transform_7, window_bounds = array<i64: 16, 32>}]} {
    %c0_i32 = arith.constant 0 : i32
    %0 = arith.cmpi eq, %arg1, %c0_i32 : i32
    %1 = arith.extui %0 : i1 to i32
    %c0_i32_0 = arith.constant 0 : i32
    %2 = arith.cmpi ne, %1, %c0_i32_0 : i32
    scf.if %2 {
      %cst_16 = arith.constant 0.000000e+00 : f32
      %20 = vector.broadcast %cst_16 : f32 to vector<16x32xf32>
      %c0_17 = arith.constant 0 : index
      %c0_18 = arith.constant 0 : index
      %21 = vector.load %arg10[%c0_17, %c0_18] : memref<16x32xf32, #tpu.memory_space<vmem>>, vector<16x32xf32>
      tpu.vector_store %arg10[%c0_17, %c0_18], %20 {strides = array<i32>} : memref<16x32xf32, #tpu.memory_space<vmem>>, vector<16x32xf32>,
    } else {
    }
    %c0 = arith.constant 0 : index
    %c0_1 = arith.constant 0 : index
    %3 = vector.load %arg2[%c0, %c0_1] : memref<16x32xbf16, #tpu.memory_space<vmem>>, vector<16x32xbf16>
    %c0_2 = arith.constant 0 : index
    %c0_3 = arith.constant 0 : index
    %4 = vector.load %arg3[%c0_2, %c0_3] : memref<32x64xbf16, #tpu.memory_space<vmem>>, vector<32x64xbf16>
    %cst = arith.constant dense<0.000000e+00> : vector<16x64xf32>
    %5 = tpu.matmul %3, %4, %cst {dimension_numbers = #tpu.dot_dimension_numbers<[1], [0], [0], [1], [0, 0, 1, 1], [], []>} : vector<16x32xbf16>, vector<32x64xbf16>, vector<16x64xf32> -> vector<16x64xf32>
    %c0_4 = arith.constant 0 : index
    %c0_5 = arith.constant 0 : index
    %6 = vector.load %arg4[%c0_4, %c0_5] : memref<1x64xf32, #tpu.memory_space<vmem>>, vector<1x64xf32>
    %7 = vector.broadcast %6 : vector<1x64xf32> to vector<16x64xf32>
    %8 = arith.addf %5, %7 : vector<16x64xf32>
    %cst_6 = arith.constant 0.000000e+00 : f32
    %9 = vector.broadcast %cst_6 : f32 to vector<16x64xf32>
    %10 = arith.maximumf %8, %9 : vector<16x64xf32>
    %c0_7 = arith.constant 0 : index
    %c0_8 = arith.constant 0 : index
    %11 = vector.load %arg10[%c0_7, %c0_8] : memref<16x32xf32, #tpu.memory_space<vmem>>, vector<16x32xf32>
    %12 = arith.truncf %10 : vector<16x64xf32> to vector<16x64xbf16>
    %c0_9 = arith.constant 0 : index
    %c0_10 = arith.constant 0 : index
    %13 = vector.load %arg5[%c0_9, %c0_10] : memref<64x32xbf16, #tpu.memory_space<vmem>>, vector<64x32xbf16>
    %cst_11 = arith.constant dense<0.000000e+00> : vector<16x32xf32>
    %14 = tpu.matmul %12, %13, %cst_11 {dimension_numbers = #tpu.dot_dimension_numbers<[1], [0], [0], [1], [0, 0, 1, 1], [], []>} : vector<16x64xbf16>, vector<64x32xbf16>, vector<16x32xf32> -> vector<16x32xf32>
    %15 = arith.addf %11, %14 : vector<16x32xf32>
    %c0_12 = arith.constant 0 : index
    %c0_13 = arith.constant 0 : index
    %16 = vector.load %arg10[%c0_12, %c0_13] : memref<16x32xf32, #tpu.memory_space<vmem>>, vector<16x32xf32>
    tpu.vector_store %arg10[%c0_12, %c0_13], %15 {strides = array<i32>} : memref<16x32xf32, #tpu.memory_space<vmem>>, vector<16x32xf32>,
    %c0_i32_14 = arith.constant 0 : i32
    %17 = arith.cmpi eq, %arg1, %c0_i32_14 : i32
    %18 = arith.extui %17 : i1 to i32
    %c0_i32_15 = arith.constant 0 : i32
    %19 = arith.cmpi ne, %18, %c0_i32_15 : i32
    scf.if %19 {
      %c0_16 = arith.constant 0 : index
      %c0_17 = arith.constant 0 : index
      %20 = vector.load %arg10[%c0_16, %c0_17] : memref<16x32xf32, #tpu.memory_space<vmem>>, vector<16x32xf32>
      %c0_18 = arith.constant 0 : index
      %c0_19 = arith.constant 0 : index
      %21 = vector.load %arg6[%c0_18, %c0_19] : memref<1x32xf32, #tpu.memory_space<vmem>>, vector<1x32xf32>
      %22 = vector.broadcast %21 : vector<1x32xf32> to vector<16x32xf32>
      %23 = arith.addf %20, %22 : vector<16x32xf32>
      %c0_20 = arith.constant 0 : index
      %c0_21 = arith.constant 0 : index
      %24 = vector.load %arg2[%c0_20, %c0_21] : memref<16x32xbf16, #tpu.memory_space<vmem>>, vector<16x32xbf16>
      %25 = arith.extf %24 : vector<16x32xbf16> to vector<16x32xf32>
      %26 = arith.addf %23, %25 : vector<16x32xf32>
      %cst_22 = arith.constant dense<0.000000e+00> : vector<16xf32>
      %27 = vector.multi_reduction <add>, %26, %cst_22 [1] : vector<16x32xf32> to vector<16xf32>
      %28 = vector.shape_cast %27 : vector<16xf32> to vector<16x1xf32>
      %cst_23 = arith.constant 3.200000e+01 : f32
      %29 = vector.broadcast %cst_23 : f32 to vector<16x1xf32>
      %30 = arith.divf %28, %29 : vector<16x1xf32>
      %31 = vector.broadcast %30 : vector<16x1xf32> to vector<16x32xf32>
      %32 = arith.subf %26, %31 : vector<16x32xf32>
      %33 = arith.mulf %32, %32 : vector<16x32xf32>
      %cst_24 = arith.constant dense<0.000000e+00> : vector<16xf32>
      %34 = vector.multi_reduction <add>, %33, %cst_24 [1] : vector<16x32xf32> to vector<16xf32>
      %35 = vector.shape_cast %34 : vector<16xf32> to vector<16x1xf32>
      %cst_25 = arith.constant 3.200000e+01 : f32
      %36 = vector.broadcast %cst_25 : f32 to vector<16x1xf32>
      %37 = arith.divf %35, %36 : vector<16x1xf32>
      %cst_26 = arith.constant 9.99999974E-6 : f32
      %38 = vector.broadcast %cst_26 : f32 to vector<16x1xf32>
      %39 = arith.addf %37, %38 : vector<16x1xf32>
      %40 = math.rsqrt %39 : vector<16x1xf32>
      %41 = vector.broadcast %40 : vector<16x1xf32> to vector<16x32xf32>
      %42 = arith.mulf %32, %41 : vector<16x32xf32>
      %c0_27 = arith.constant 0 : index
      %c0_28 = arith.constant 0 : index
      %43 = vector.load %arg7[%c0_27, %c0_28] : memref<1x32xf32, #tpu.memory_space<vmem>>, vector<1x32xf32>
      %44 = vector.broadcast %43 : vector<1x32xf32> to vector<16x32xf32>
      %45 = arith.mulf %42, %44 : vector<16x32xf32>
      %c0_29 = arith.constant 0 : index
      %c0_30 = arith.constant 0 : index
      %46 = vector.load %arg8[%c0_29, %c0_30] : memref<1x32xf32, #tpu.memory_space<vmem>>, vector<1x32xf32>
      %47 = vector.broadcast %46 : vector<1x32xf32> to vector<16x32xf32>
      %48 = arith.addf %45, %47 : vector<16x32xf32>
      %49 = arith.truncf %48 : vector<16x32xf32> to vector<16x32xbf16>
      %c0_31 = arith.constant 0 : index
      %c0_32 = arith.constant 0 : index
      %50 = vector.load %arg9[%c0_31, %c0_32] : memref<16x32xbf16, #tpu.memory_space<vmem>>, vector<16x32xbf16>
      tpu.vector_store %arg9[%c0_31, %c0_32], %49 {strides = array<i32>} : memref<16x32xbf16, #tpu.memory_space<vmem>>, vector<16x32xbf16>,
    } else {
    }
    return
  }
  func.func @transform_0(%arg0: i32, %arg1: i32) -> (i32, i32) {
    %c0_i32 = arith.constant 0 : i32
    %c0_i32_0 = arith.constant 0 : i32
    return %arg0, %c0_i32 : i32, i32
  }
  func.func @transform_1(%arg0: i32, %arg1: i32) -> (i32, i32) {
    %c0_i32 = arith.constant 0 : i32
    %c0_i32_0 = arith.constant 0 : i32
    return %c0_i32, %arg1 : i32, i32
  }
  func.func @transform_2(%arg0: i32, %arg1: i32) -> (i32, i32) {
    %c0_i32 = arith.constant 0 : i32
    %c0_i32_0 = arith.constant 0 : i32
    return %c0_i32, %arg1 : i32, i32
  }
  func.func @transform_3(%arg0: i32, %arg1: i32) -> (i32, i32) {
    %c0_i32 = arith.constant 0 : i32
    %c0_i32_0 = arith.constant 0 : i32
    return %arg1, %c0_i32 : i32, i32
  }
  func.func @transform_4(%arg0: i32, %arg1: i32) -> (i32, i32) {
    %c0_i32 = arith.constant 0 : i32
    %c0_i32_0 = arith.constant 0 : i32
    %c0_i32_1 = arith.constant 0 : i32
    return %c0_i32, %c0_i32_0 : i32, i32
  }
  func.func @transform_5(%arg0: i32, %arg1: i32) -> (i32, i32) {
    %c0_i32 = arith.constant 0 : i32
    %c0_i32_0 = arith.constant 0 : i32
    %c0_i32_1 = arith.constant 0 : i32
    return %c0_i32, %c0_i32_0 : i32, i32
  }
  func.func @transform_6(%arg0: i32, %arg1: i32) -> (i32, i32) {
    %c0_i32 = arith.constant 0 : i32
    %c0_i32_0 = arith.constant 0 : i32
    %c0_i32_1 = arith.constant 0 : i32
    return %c0_i32, %c0_i32_0 : i32, i32
  }
  func.func @transform_7(%arg0: i32, %arg1: i32) -> (i32, i32) {
    %c0_i32 = arith.constant 0 : i32
    %c0_i32_0 = arith.constant 0 : i32
    return %arg0, %c0_i32 : i32, i32
  }
}

module attributes {stable_mosaic.version = 11 : i64} {
  func.func @_nll_kernel(%arg0: i32, %arg1: i32, %arg2: memref<16x32xbf16, #tpu.memory_space<vmem>>, %arg3: memref<32x64xbf16, #tpu.memory_space<vmem>>, %arg4: memref<1x64xf32, #tpu.memory_space<vmem>>, %arg5: memref<16x1xi32, #tpu.memory_space<vmem>>, %arg6: memref<16x1xf32, #tpu.memory_space<vmem>>, %arg7: memref<16x1xf32, #tpu.memory_space<vmem>>, %arg8: memref<16x1xf32, #tpu.memory_space<vmem>>, %arg9: memref<16x1xf32, #tpu.memory_space<vmem>>) attributes {dimension_semantics = [#tpu.dimension_semantics<parallel>, #tpu.dimension_semantics<arbitrary>], iteration_bounds = array<i64: 1, 1>, scalar_prefetch = 0 : i64, scratch_operands = 3 : i64, tpu.core_type = #tpu.core_type<tc>, window_params = [{transform_indices = @transform_0, window_bounds = array<i64: 16, 32>}, {transform_indices = @transform_1, window_bounds = array<i64: 32, 64>}, {transform_indices = @transform_2, window_bounds = array<i64: 1, 64>}, {transform_indices = @transform_3, window_bounds = array<i64: 16, 1>}, {transform_indices = @transform_4, window_bounds = array<i64: 16, 1>}]} {
    %c0_i32 = arith.constant 0 : i32
    %0 = arith.cmpi eq, %arg1, %c0_i32 : i32
    %1 = arith.extui %0 : i1 to i32
    %c0_i32_0 = arith.constant 0 : i32
    %2 = arith.cmpi ne, %1, %c0_i32_0 : i32
    scf.if %2 {
      %cst_28 = arith.constant 0xFF800000 : f32
      %43 = vector.broadcast %cst_28 : f32 to vector<16x1xf32>
      %c0_29 = arith.constant 0 : index
      %c0_30 = arith.constant 0 : index
      %44 = vector.load %arg7[%c0_29, %c0_30] : memref<16x1xf32, #tpu.memory_space<vmem>>, vector<16x1xf32>
      tpu.vector_store %arg7[%c0_29, %c0_30], %43 {strides = array<i32>} : memref<16x1xf32, #tpu.memory_space<vmem>>, vector<16x1xf32>,
      %cst_31 = arith.constant 0.000000e+00 : f32
      %45 = vector.broadcast %cst_31 : f32 to vector<16x1xf32>
      %c0_32 = arith.constant 0 : index
      %c0_33 = arith.constant 0 : index
      %46 = vector.load %arg8[%c0_32, %c0_33] : memref<16x1xf32, #tpu.memory_space<vmem>>, vector<16x1xf32>
      tpu.vector_store %arg8[%c0_32, %c0_33], %45 {strides = array<i32>} : memref<16x1xf32, #tpu.memory_space<vmem>>, vector<16x1xf32>,
      %cst_34 = arith.constant 0.000000e+00 : f32
      %47 = vector.broadcast %cst_34 : f32 to vector<16x1xf32>
      %c0_35 = arith.constant 0 : index
      %c0_36 = arith.constant 0 : index
      %48 = vector.load %arg9[%c0_35, %c0_36] : memref<16x1xf32, #tpu.memory_space<vmem>>, vector<16x1xf32>
      tpu.vector_store %arg9[%c0_35, %c0_36], %47 {strides = array<i32>} : memref<16x1xf32, #tpu.memory_space<vmem>>, vector<16x1xf32>,
    } else {
    }
    %c0 = arith.constant 0 : index
    %c0_1 = arith.constant 0 : index
    %3 = vector.load %arg2[%c0, %c0_1] : memref<16x32xbf16, #tpu.memory_space<vmem>>, vector<16x32xbf16>
    %c0_2 = arith.constant 0 : index
    %c0_3 = arith.constant 0 : index
    %4 = vector.load %arg3[%c0_2, %c0_3] : memref<32x64xbf16, #tpu.memory_space<vmem>>, vector<32x64xbf16>
    %cst = arith.constant dense<0.000000e+00> : vector<16x64xf32>
    %5 = tpu.matmul %3, %4, %cst {dimension_numbers = #tpu.dot_dimension_numbers<[1], [0], [0], [1], [0, 0, 1, 1], [], []>} : vector<16x32xbf16>, vector<32x64xbf16>, vector<16x64xf32> -> vector<16x64xf32>
    %c0_4 = arith.constant 0 : index
    %c0_5 = arith.constant 0 : index
    %6 = vector.load %arg4[%c0_4, %c0_5] : memref<1x64xf32, #tpu.memory_space<vmem>>, vector<1x64xf32>
    %7 = vector.broadcast %6 : vector<1x64xf32> to vector<16x64xf32>
    %8 = arith.addf %5, %7 : vector<16x64xf32>
    %9 = tpu.iota {dimensions = array<i32: 1>} : vector<16x64xi32>
    %c64_i32 = arith.constant 64 : i32
    %10 = arith.muli %arg1, %c64_i32 : i32
    %11 = vector.broadcast %10 : i32 to vector<16x64xi32>
    %12 = arith.addi %9, %11 : vector<16x64xi32>
    %c0_6 = arith.constant 0 : index
    %c0_7 = arith.constant 0 : index
    %13 = vector.load %arg5[%c0_6, %c0_7] : memref<16x1xi32, #tpu.memory_space<vmem>>, vector<16x1xi32>
    %14 = vector.broadcast %13 : vector<16x1xi32> to vector<16x64xi32>
    %15 = arith.cmpi eq, %12, %14 : vector<16x64xi32>
    %c0_8 = arith.constant 0 : index
    %c0_9 = arith.constant 0 : index
    %16 = vector.load %arg9[%c0_8, %c0_9] : memref<16x1xf32, #tpu.memory_space<vmem>>, vector<16x1xf32>
    %cst_10 = arith.constant 0.000000e+00 : f32
    %17 = vector.broadcast %cst_10 : f32 to vector<16x64xf32>
    %18 = arith.select %15, %8, %17 : vector<16x64xi1>, vector<16x64xf32>
    %cst_11 = arith.constant dense<0.000000e+00> : vector<16xf32>
    %19 = vector.multi_reduction <add>, %18, %cst_11 [1] : vector<16x64xf32> to vector<16xf32>
    %20 = vector.shape_cast %19 : vector<16xf32> to vector<16x1xf32>
    %21 = arith.addf %16, %20 : vector<16x1xf32>
    %c0_12 = arith.constant 0 : index
    %c0_13 = arith.constant 0 : index
    %22 = vector.load %arg9[%c0_12, %c0_13] : memref<16x1xf32, #tpu.memory_space<vmem>>, vector<16x1xf32>
    tpu.vector_store %arg9[%c0_12, %c0_13], %21 {strides = array<i32>} : memref<16x1xf32, #tpu.memory_space<vmem>>, vector<16x1xf32>,
    %c0_14 = arith.constant 0 : index
    %c0_15 = arith.constant 0 : index
    %23 = vector.load %arg7[%c0_14, %c0_15] : memref<16x1xf32, #tpu.memory_space<vmem>>, vector<16x1xf32>
    %cst_16 = arith.constant dense<0xFF800000> : vector<16xf32>
    %24 = vector.multi_reduction <maximumf>, %8, %cst_16 [1] : vector<16x64xf32> to vector<16xf32>
    %25 = vector.shape_cast %24 : vector<16xf32> to vector<16x1xf32>
    %26 = arith.maximumf %23, %25 : vector<16x1xf32>
    %c0_17 = arith.constant 0 : index
    %c0_18 = arith.constant 0 : index
    %27 = vector.load %arg8[%c0_17, %c0_18] : memref<16x1xf32, #tpu.memory_space<vmem>>, vector<16x1xf32>
    %c0_19 = arith.constant 0 : index
    %c0_20 = arith.constant 0 : index
    %28 = vector.load %arg7[%c0_19, %c0_20] : memref<16x1xf32, #tpu.memory_space<vmem>>, vector<16x1xf32>
    %29 = arith.subf %28, %26 : vector<16x1xf32>
    %30 = math.exp %29 : vector<16x1xf32>
    %31 = arith.mulf %27, %30 : vector<16x1xf32>
    %32 = vector.broadcast %26 : vector<16x1xf32> to vector<16x64xf32>
    %33 = arith.subf %8, %32 : vector<16x64xf32>
    %34 = math.exp %33 : vector<16x64xf32>
    %cst_21 = arith.constant dense<0.000000e+00> : vector<16xf32>
    %35 = vector.multi_reduction <add>, %34, %cst_21 [1] : vector<16x64xf32> to vector<16xf32>
    %36 = vector.shape_cast %35 : vector<16xf32> to vector<16x1xf32>
    %37 = arith.addf %31, %36 : vector<16x1xf32>
    %c0_22 = arith.constant 0 : index
    %c0_23 = arith.constant 0 : index
    %38 = vector.load %arg8[%c0_22, %c0_23] : memref<16x1xf32, #tpu.memory_space<vmem>>, vector<16x1xf32>
    tpu.vector_store %arg8[%c0_22, %c0_23], %37 {strides = array<i32>} : memref<16x1xf32, #tpu.memory_space<vmem>>, vector<16x1xf32>,
    %c0_24 = arith.constant 0 : index
    %c0_25 = arith.constant 0 : index
    %39 = vector.load %arg7[%c0_24, %c0_25] : memref<16x1xf32, #tpu.memory_space<vmem>>, vector<16x1xf32>
    tpu.vector_store %arg7[%c0_24, %c0_25], %26 {strides = array<i32>} : memref<16x1xf32, #tpu.memory_space<vmem>>, vector<16x1xf32>,
    %c0_i32_26 = arith.constant 0 : i32
    %40 = arith.cmpi eq, %arg1, %c0_i32_26 : i32
    %41 = arith.extui %40 : i1 to i32
    %c0_i32_27 = arith.constant 0 : i32
    %42 = arith.cmpi ne, %41, %c0_i32_27 : i32
    scf.if %42 {
      %c0_28 = arith.constant 0 : index
      %c0_29 = arith.constant 0 : index
      %43 = vector.load %arg7[%c0_28, %c0_29] : memref<16x1xf32, #tpu.memory_space<vmem>>, vector<16x1xf32>
      %c0_30 = arith.constant 0 : index
      %c0_31 = arith.constant 0 : index
      %44 = vector.load %arg8[%c0_30, %c0_31] : memref<16x1xf32, #tpu.memory_space<vmem>>, vector<16x1xf32>
      %45 = math.log %44 : vector<16x1xf32>
      %46 = arith.addf %43, %45 : vector<16x1xf32>
      %c0_32 = arith.constant 0 : index
      %c0_33 = arith.constant 0 : index
      %47 = vector.load %arg9[%c0_32, %c0_33] : memref<16x1xf32, #tpu.memory_space<vmem>>, vector<16x1xf32>
      %48 = arith.subf %46, %47 : vector<16x1xf32>
      %c0_34 = arith.constant 0 : index
      %c0_35 = arith.constant 0 : index
      %49 = vector.load %arg6[%c0_34, %c0_35] : memref<16x1xf32, #tpu.memory_space<vmem>>, vector<16x1xf32>
      tpu.vector_store %arg6[%c0_34, %c0_35], %48 {strides = array<i32>} : memref<16x1xf32, #tpu.memory_space<vmem>>, vector<16x1xf32>,
    } else {
    }
    return
  }
  func.func @transform_0(%arg0: i32, %arg1: i32) -> (i32, i32) {
    %c0_i32 = arith.constant 0 : i32
    %c0_i32_0 = arith.constant 0 : i32
    return %arg0, %c0_i32 : i32, i32
  }
  func.func @transform_1(%arg0: i32, %arg1: i32) -> (i32, i32) {
    %c0_i32 = arith.constant 0 : i32
    %c0_i32_0 = arith.constant 0 : i32
    return %c0_i32, %arg1 : i32, i32
  }
  func.func @transform_2(%arg0: i32, %arg1: i32) -> (i32, i32) {
    %c0_i32 = arith.constant 0 : i32
    %c0_i32_0 = arith.constant 0 : i32
    return %c0_i32, %arg1 : i32, i32
  }
  func.func @transform_3(%arg0: i32, %arg1: i32) -> (i32, i32) {
    %c0_i32 = arith.constant 0 : i32
    %c0_i32_0 = arith.constant 0 : i32
    return %arg0, %c0_i32 : i32, i32
  }
  func.func @transform_4(%arg0: i32, %arg1: i32) -> (i32, i32) {
    %c0_i32 = arith.constant 0 : i32
    %c0_i32_0 = arith.constant 0 : i32
    return %arg0, %c0_i32 : i32, i32
  }
}

</mosaic_0001>

<bundles_post_ra>
// kernel: _lambda_.11
= control target key start
LH: loop header
LB: loop body
LE: loop exit
PB: predicated region body
PF: predicated region fallthrough
CT: control target
= control target key end

     0   :  { %vm16_vm0 = vcmask 785408   ;;  %v138_v0 = vmov 0.0   ;;  %vm139_vm1 = vmmov 0   ;;  %vm44_vm2 = vcmask 261120   ;;  %s174_s1 = inlined_call_operand.vmem [shape: bf16[32,96], index: 1, kind: input, shape index: {}]   ;;  %s175_s0 = inlined_call_operand.vmem [shape: bf16[16,32], index: 0, kind: input, shape index: {}]   ;;  %s176_s2 = inlined_call_operand.vmem [shape: bf16[16,96], index: 2, kind: output, shape index: {}]  }
   0x1   :  { %125 = vmatprep.subr.bf16.mxu0 %v138_v0  ;;  %v135_v1 = vld [vmem:[%s174_s1 + $0x8] sm:$0xff]   ;;  %129 = vmatprep.mubr.msk.bf16.mxu0 %vm139_vm1, %v138_v0  ;;  %17 = vst.msk [vmem:[#allocation2] sm:$0xff] %vm16_vm0, %v138_v0  ;;  %18 = vst.msk [vmem:[#allocation2 + $0x8] sm:$0xff] %vm16_vm0, %v138_v0  ;;  %v136_v2 = vld [vmem:[%s174_s1] sm:$0xff]   ;;  %vm107_vm3 = vcmask 781312  }
   0x2   :  { %126 = vmatpush3.bf16.msra.mxu0 %v135_v1  ;;  %v137_v3 = vld [vmem:[%s175_s0] sm:$0xff]  }
   0x3   :  { %127 = vmatprep.subr.bf16.mxu0 %v138_v0 }
   0x6   :  { %128 = vmatpush3.bf16.msra.mxu0 %v136_v2 }
   0x8   :  { %v19_v4 = vld [vmem:[#allocation2] sm:$0xff]  ;;  %v20_v8 = vld [vmem:[#allocation2 + $0x8] sm:$0xff] }
   0x9   :  { %130 = vmatmul.mubr.msk.bf16.vlgmr.msra.gmra.mxu0 %vm44_vm2, %v137_v3 }
  0xc9   :  { %v82_v5 = vpop.f32.mrf.mxu0 }
  0xca   :  { %v89_v6 = vadd.f32 %v82_v5, %v19_v4 }
  0xcb   :  { %v131_v7 = vpop.f32.mrf.mxu0 }
  0xcc   :  { %92 = vst.msk [vmem:[#allocation2] sm:$0xff] %vm16_vm0, %v89_v6 }
  0xcd   :  { %v85_v9 = vpop.f32.mrf.mxu0 }
  0xce   :  { %v90_v10 = vadd.f32 %v85_v9, %v20_v8 }
  0xcf   :  { %v132_v11 = vpop.f32.mrf.mxu0 }
  0xd0   :  { %93 = vst.msk [vmem:[#allocation2 + $0x8] sm:$0xff] %vm16_vm0, %v90_v10 }
  0xd3   :  { %v97_v12 = vld [vmem:[#allocation2] sm:$0xff] }
  0xd4   :  { %v120_v13 = vpack.c.bf16 %v97_v12, %v97_v12 }
  0xd6   :  { %108 = vst.msk [vmem:[%s176_s2] sm:$0xf] %vm107_vm3, %v120_v13 }
  0xd7   :  { %v98_v14 = vld [vmem:[#allocation2 + $0x8] sm:$0xff] }
  0xd8   :  { %v121_v15 = vpack.c.bf16 %v98_v14, %v98_v14 }
  0xda   :  { %109 = vst.msk [vmem:[%s176_s2 + $0x4] sm:$0xf] %vm107_vm3, %v121_v15 }

// kernel: _lambda_.12
= control target key start
LH: loop header
LB: loop body
LE: loop exit
PB: predicated region body
PF: predicated region fallthrough
CT: control target
= control target key end

     0   :  { %vm16_vm0 = vcmask 261120   ;;  %v111_v0 = vmov 0.0   ;;  %vm112_vm1 = vmmov 0   ;;  %vm87_vm2 = vcmask 257024   ;;  %s143_s1 = inlined_call_operand.vmem [shape: bf16[32,32], index: 1, kind: input, shape index: {}]   ;;  %s144_s0 = inlined_call_operand.vmem [shape: bf16[8,32], index: 0, kind: input, shape index: {}]   ;;  %s145_s2 = inlined_call_operand.vmem [shape: bf16[8,32], index: 2, kind: output, shape index: {}]  }
   0x1   :  { %99 = vmatprep.subr.bf16.mxu0 %v111_v0  ;;  %v109_v1 = vld [vmem:[%s143_s1 + $0x8] sm:$0xff]   ;;  %103 = vmatprep.mubr.msk.bf16.mxu0 %vm112_vm1, %v111_v0  ;;  %17 = vst.msk [vmem:[#allocation2] sm:$0xff] %vm16_vm0, %v111_v0  ;;  %v110_v2 = vld [vmem:[%s143_s1] sm:$0xff]  }
   0x2   :  { %100 = vmatpush3.bf16.msra.mxu0 %v109_v1  ;;  %v19_v3 = vld [vmem:[%s144_s0] sm:$0xf] }
   0x3   :  { %101 = vmatprep.subr.bf16.mxu0 %v111_v0 }
   0x6   :  { %102 = vmatpush3.bf16.msra.mxu0 %v110_v2 }
   0x8   :  { %v18_v4 = vld [vmem:[#allocation2] sm:$0xff] }
   0x9   :  { %104 = vmatmul.mubr.msk.bf16.vlgmr.msra.gmra.mxu0 %vm16_vm0, %v19_v3 }
  0xc9   :  { %v74_v5 = vpop.f32.mrf.mxu0 }
  0xca   :  { %v80_v6 = vadd.f32 %v74_v5, %v18_v4 }
  0xcb   :  { %v105_v7 = vpop.f32.mrf.mxu0 }
  0xcc   :  { %81 = vst.msk [vmem:[#allocation2] sm:$0xff] %vm16_vm0, %v80_v6 }
  0xcd   :  { %v77_v8 = vpop.f32.mrf.mxu0 }
  0xcf   :  { %v106_v9 = vpop.f32.mrf.mxu0 }
  0xd3   :  { %v85_v10 = vld [vmem:[#allocation2] sm:$0xff] }
  0xd4   :  { %v86_v11 = vpack.c.bf16 %v85_v10, %v85_v10 }
  0xd6   :  { %88 = vst.msk [vmem:[%s145_s2] sm:$0xf] %vm87_vm2, %v86_v11 }

// kernel: _lambda_.13
= control target key start
LH: loop header
LB: loop body
LE: loop exit
PB: predicated region body
PF: predicated region fallthrough
CT: control target
= control target key end

     0   :  { %s961_s21 = smov 0   ;;  %s963_s22 = smov 0   ;;  %s1049_s0 = inlined_call_operand.vmem [shape: bf16[2,2,8,16], index: 0, kind: input, shape index: {}]   ;;  %s1050_s1 = inlined_call_operand.vmem [shape: bf16[2,2,8,16], index: 1, kind: input, shape index: {}]   ;;  %s1051_s2 = inlined_call_operand.vmem [shape: bf16[2,2,8,16], index: 2, kind: input, shape index: {}]   ;;  %s1052_s3 = inlined_call_operand.vmem [shape: bf16[2,8,16], index: 3, kind: input, shape index: {}]   ;;  %s1053_s4 = inlined_call_operand.vmem [shape: f32[2,1,16], index: 4, kind: input, shape index: {}]   ;;  %s1054_s5 = inlined_call_operand.vmem [shape: f32[2,1,16], index: 5, kind: input, shape index: {}]   ;;  %s1055_s6 = inlined_call_operand.vmem [shape: bf16[2,2,8,16], index: 6, kind: output, shape index: {}]  }
   0x1   :  { %s965_s23 = smov 0   ;;  %s967_s24 = smov 0  }
   0x2   :  { %s969_s25 = smov 0  }
   0x3 LB: > { %s25_s26 = sadd.s32 1, %s908_s23  ;;  %s28_s27 = sadd.s32 1, %s912_s24  ;;  %s916_s25 = sphi %s969_s25, %s16_s25   ;;  %s912_s24 = sphi %s967_s24, %s1059_s24   ;;  %s908_s23 = sphi %s965_s23, %s1058_s23   ;;  %s904_s22 = sphi %s963_s22, %s1057_s22   ;;  %s900_s21 = sphi %s961_s21, %s1056_s21  }
   0x4   : > { %p26_p0 = scmp.ge.s32.totalorder %s25_s26, 2  ;;  %p785_p1 = scmp.ge.s32.totalorder %s916_s25, 1 }
   0x5   : > { %p286_p2 = scmp.lt.s32.totalorder %s916_s25, 5 }
   0x6   : > { %s1061_s26 = smov (%p26_p0, %s25_s26), 0  ;;  %s1063_s27 = smov (!%p26_p0, %s28_s27), %s912_s24 }
   0x7   : > { %p287_p3 = pnand %p785_p1, %p286_p2  ;;  %p30_p4 = scmp.ge.s32.totalorder %s1063_s27, 2 }
   0x8   : > { %p350_p5 = scmp.lt.s32.totalorder (!%p287_p3), %s900_s21, 1  ;;  %p348_p6 = scmp.lt.s32.totalorder (!%p287_p3), %s904_s22, 1 }
   0x9   : > { %s1065_s27 = smov (%p30_p4, %s1063_s27), 0  ;;  %290 = sbr.rel (%p287_p3) target bundleno = 1212 (0x4bc), region = 44 }
   0xa   : > { %s920_s17 = smov (!%p287_p3), 121   ;;  %s921_s18 = smov (!%p287_p3), 1  }
   0xe   : > { %v918_v0 = vmov 0.0   ;;  %vm919_vm0 = vmmov 0   ;;  %s1067_s21 = smov (!%p350_p5, %s900_s21), 1  ;;  %s1069_s22 = smov (!%p348_p6, %s904_s22), 1  ;;  %vm414_vm1 = vcmask 130048   ;;  %vm470_vm2 = vcmask 7168  }
   0xf   : > { %808 = vmatprep.subr.bf16.mxu0 %v918_v0  ;;  %810 = vmatprep.mubr.msk.bf16.mxu0 %vm919_vm0, %v918_v0  ;;  %s792_s28 = sshll.u32 %s1067_s21, 2  ;;  %s786_s8 = sshll.u32 %s1069_s22, 1  ;;  %v461_v20 = vlaneseq  ;;  %vm492_vm4 = vcmask 15360   ;;  %vm507_vm6 = vcmask 31744   ;;  %vm566_vm9 = vcmask 64512  }
  0x10   : > { %814 = vmatprep.subr.bf16.mxu1 %v918_v0  ;;  %816 = vmatprep.mubr.msk.bf16.mxu1 %vm919_vm0, %v918_v0  ;;  %s375_s7 = scalar_lea.vmem %s1052_s3, %s792_s28  ;;  %s353_s9 = sadd.s32 %s786_s8, %s1067_s21  ;;  %vm582_vm10 = vcmask 1043456   ;;  %vm627_vm11 = vcmask 125952  }
  0x11   : > { %v395_v1 = vld [vmem:[%s375_s7] sm:$0xf]  ;;  %s381_s12 = scalar_lea.vmem %s1054_s5, %s1067_s21  ;;  %s1005_s13 = sshll.u32 %s353_s9, 2  ;;  %v462_v21 = vshrl.u32 %v461_v20, 7  ;;  %v563_v41 = vand.u32 127, %v461_v20 }
  0x12   : > { %v419_v2 = vsel %vm414_vm1, %v395_v1, 0  ;;  %s355_s16 = scalar_lea.vmem %s1049_s0, %s1005_s13  ;;  %v796_v4 = vld [vmem:[%s381_s12] ss:$0 sm:$0xff]  ;;  %s363_s22 = scalar_lea.vmem %s1050_s1, %s1005_s13 }
  0x13   : > { %809 = vmatpush3.bf16.xpose.msra.mxu0 %v419_v2  ;;  %v391_v3 = vld [vmem:[%s355_s16] sm:$0xf]  ;;  %s378_s30 = scalar_lea.vmem %s1053_s4, %s1067_s21  ;;  %v480_v22 = vand.u32 1, %v462_v21  ;;  %s922_s21 = smov 2   ;;  %v494_v31 = vshra.s32 %v462_v21, 1  ;;  %v509_v37 = vshra.s32 %v462_v21, 2  ;;  %vm564_vm8 = vcmp.gt.s32.totalorder %v563_v41, %v462_v21 }
  0x14   : > { %820 = vmatprep.subr.bf16.mxu0 %v918_v0  ;;  %v392_v5 = vunpack.c.l.bf16 %v391_v3  ;;  %v393_v13 = vld [vmem:[%s363_s22] sm:$0xf]  ;;  %s923_s7 = smov 122   ;;  %s924_s8 = smov 4  }
  0x15   : > { %v795_v14 = vld [vmem:[%s378_s30] ss:$0 sm:$0xff]  ;;  %v519_v15 = vsel %vm414_vm1, %v393_v13, 0  ;;  %vm481_vm3 = vcmp.eq.s32.totalorder %v480_v22, 1  ;;  %v495_v32 = vand.u32 1, %v494_v31  ;;  %s925_s9 = smov 124   ;;  %s371_s12 = scalar_lea.vmem %s1051_s2, %s1005_s13 }
  0x16   : > { %v412_v6 = vadd.f32 %v796_v4, %v392_v5  ;;  %v403_v16 = vadd.f32 %v795_v14, %v392_v5  ;;  %815 = vmatpush3.bf16.xpose.msra.mxu1 %v519_v15  ;;  %v510_v38 = vand.u32 1, %v509_v37  ;;  %v394_v53 = vld [vmem:[%s371_s12] sm:$0xf]  ;;  %s389_s16 = scalar_lea.vmem %s1055_s6, %s1005_s13 }
  0x17   : > { %vm496_vm5 = vcmp.eq.s32.totalorder %v495_v32, 1  ;;  %v584_v54 = vsel %vm582_vm10, %v394_v53, 0 }
  0x18   : > { %v413_v7 = vpack.c.bf16 %v412_v6, %v412_v6  ;;  %v404_v19 = vpack.c.bf16 %v403_v16, %v403_v16  ;;  %vm511_vm7 = vcmp.eq.s32.totalorder %v510_v38, 1 }
  0x1a   : > { %811 = vmatmul.mubr.msk.bf16.vlgmr.msra.gmra.mxu0 %vm414_vm1, %v413_v7 }
  0x1b   : > { %822 = vmatprep.mubr.msk.bf16.mxu0 %vm919_vm0, %v918_v0  ;;  %821 = vmatpush3.bf16.msra.mxu0 %v584_v54 }
  0x1d   : > { %817 = vmatmul.mubr.msk.bf16.vlgmr.msra.gmra.mxu1 %vm414_vm1, %v404_v19 }
  0xda   : > { %v455_v8 = vpop.f32.mrf.mxu0 }
  0xdb   : > { %464 = vrot.lane.b32.xlu0 %v455_v8, %s920_s17 }
  0xdc   : > { %v812_v9 = vpop.f32.mrf.mxu0 }
  0xdd   : > { %v555_v27 = vpop.f32.mrf.mxu1 }
  0xde   : > { %v458_v10 = vpop.f32.mrf.mxu0 }
  0xdf   : > { %467 = vrot.lane.b32.xlu0 %v455_v8, %s921_s18  ;;  %v818_v28 = vpop.f32.mrf.mxu1 }
  0xe0   : > { %v813_v11 = vpop.f32.mrf.mxu0 }
  0xe1   : > { %v558_v29 = vpop.f32.mrf.mxu1 }
  0xe3   : > { %v819_v30 = vpop.f32.mrf.mxu1 }
 0x14d   : > { %v465_v12 = vpop.permute.xlu0 %464 }
 0x151   : > { %v468_v17 = vpop.permute.xlu0 %467 }
 0x152   : > { %v471_v18 = vsel %vm470_vm2, %v465_v12, %v468_v17 }
 0x153   : > { %473 = vrot.lane.b32.xlu1 %v471_v18, %s920_s17 }
 0x157   : > { %476 = vrot.lane.b32.xlu1 %v471_v18, %s921_s18 }
 0x1c5   : > { %v474_v23 = vpop.permute.xlu1 %473 }
 0x1c9   : > { %v477_v24 = vpop.permute.xlu1 %476 }
 0x1ca   : > { %v479_v25 = vsel %vm470_vm2, %v474_v23, %v477_v24 }
 0x1cb   : > { %v484_v26 = vsel %vm481_vm3, %v479_v25, %v471_v18 }
 0x1cc   : > { %489 = vrot.lane.b32.xlu1 %v484_v26, %s922_s21  ;;  %486 = vrot.lane.b32.xlu0 %v484_v26, %s923_s7 }
 0x23e   : > { %v490_v33 = vpop.permute.xlu1 %489  ;;  %v487_v34 = vpop.permute.xlu0 %486 }
 0x23f   : > { %v493_v35 = vsel %vm492_vm4, %v487_v34, %v490_v33 }
 0x240   : > { %v499_v36 = vsel %vm496_vm5, %v493_v35, %v484_v26 }
 0x241   : > { %504 = vrot.lane.b32.xlu1 %v499_v36, %s924_s8  ;;  %501 = vrot.lane.b32.xlu0 %v499_v36, %s925_s9 }
 0x2b3   : > { %v505_v39 = vpop.permute.xlu1 %504  ;;  %v502_v40 = vpop.permute.xlu0 %501 }
 0x2b4   : > { %v508_v42 = vsel %vm507_vm6, %v502_v40, %v505_v39 }
 0x2b5   : > { %v514_v43 = vsel %vm511_vm7, %v508_v42, %v499_v36 }
 0x2b6   : > { %v556_v44 = vadd.f32 %v555_v27, %v514_v43 }
 0x2b8   : > { %v561_v45 = vmul.f32 0.25, %v556_v44 }
 0x2ba   : > { %v565_v46 = vsel %vm564_vm8, -1e+30, %v561_v45 }
 0x2bb   : > { %v567_v47 = vsel %vm566_vm9, %v565_v46, -inf }
 0x2bc   : > { %568 = vmax.xlane.f32.xlu0 %v567_v47 }
 0x345   : > { %v569_v48 = vpop.xlane.xlu0 %568 }
 0x346   : > { %v570_v49 = vsub.f32 %v565_v46, %v569_v48 }
 0x348   : > { %v571_v50 = vmul.f32 1.442695, %v570_v49 }
 0x34a   : > { %874 = vpow2.f32 %v571_v50 }
 0x357   : > { %v875_v51 = vpop.eup %874 }
 0x358   : > { %v573_v52 = vsel %vm566_vm9, %v875_v51, 0.0 }
 0x359   : > { %574 = vadd.xlane.f32.xlu1 %v573_v52 }
 0x3e2   : > { %v575_v55 = vpop.xlane.xlu1 %574 }
 0x3e3   : > { %876 = vrcp.f32 %v575_v55 }
 0x3f0   : > { %v877_v56 = vpop.eup %876 }
 0x3f1   : > { %v577_v57 = vmul.f32 %v877_v56, %v875_v51 }
 0x3f3   : > { %v578_v58 = vpack.c.bf16 %v577_v57, %v577_v57 }
 0x3f5   : > { %823 = vmatmul.mubr.msk.bf16.vlgmr.msra.gmra.mxu0 %vm566_vm9, %v578_v58 }
 0x4b5   : > { %v620_v59 = vpop.f32.mrf.mxu0 }
 0x4b6   : > { %v626_v60 = vpack.c.bf16 %v620_v59, %v620_v59 }
 0x4b7   : > { %v824_v61 = vpop.f32.mrf.mxu0 }
 0x4b8   : > { %628 = vst.msk [vmem:[%s389_s16] sm:$0xf] %vm627_vm11, %v626_v60 }
 0x4b9   : > { %v623_v62 = vpop.f32.mrf.mxu0 }
 0x4bb   : > { %v825_v63 = vpop.f32.mrf.mxu0 }
 0x4bc PF: > { %s16_s25 = sadd.s32 1, %s916_s25   ;;  %s1056_s21 = smov %s908_s23 }
 0x4bd   : > { %p13_p7 = scmp.ge.s32.totalorder %s16_s25, 6   ;;  %s1057_s22 = smov %s912_s24 }
 0x4be   : > { %s1058_s23 = smov %s1061_s26  ;;  %s1059_s24 = smov %s1065_s27 }
 0x4bf   :  { %15 = sbr.rel (!%p13_p7) target bundleno = 3 (0x3), region = 89 }

// kernel: _lambda_.14
= control target key start
LH: loop header
LB: loop body
LE: loop exit
PB: predicated region body
PF: predicated region fallthrough
CT: control target
= control target key end

     0   :  { %vm25_vm0 = vcmask 261120   ;;  %v207_v0 = vmov 0.0   ;;  %vm208_vm1 = vmmov 0   ;;  %vm166_vm2 = vcmask 257024   ;;  %s272_s1 = inlined_call_operand.vmem [shape: bf16[32,32], index: 1, kind: input, shape index: {}]   ;;  %s273_s0 = inlined_call_operand.vmem [shape: bf16[16,32], index: 0, kind: input, shape index: {}]   ;;  %s274_s2 = inlined_call_operand.vmem [shape: bf16[16,32], index: 2, kind: input, shape index: {}]   ;;  %s275_s3 = inlined_call_operand.vmem [shape: f32[1,32], index: 3, kind: input, shape index: {}]   ;;  %s276_s4 = inlined_call_operand.vmem [shape: f32[1,32], index: 4, kind: input, shape index: {}]   ;;  %s277_s5 = inlined_call_operand.vmem [shape: bf16[16,32], index: 5, kind: output, shape index: {}]  }
   0x1   :  { %190 = vmatprep.subr.bf16.mxu0 %v207_v0  ;;  %v200_v1 = vld [vmem:[%s272_s1 + $0x8] sm:$0xff]   ;;  %194 = vmatprep.mubr.msk.bf16.mxu0 %vm208_vm1, %v207_v0  ;;  %26 = vst.msk [vmem:[#allocation2] sm:$0xff] %vm25_vm0, %v207_v0  ;;  %27 = vst.msk [vmem:[#allocation2 + $0x8] sm:$0xff] %vm25_vm0, %v207_v0  ;;  %v201_v2 = vld [vmem:[%s272_s1] sm:$0xff]  }
   0x2   :  { %191 = vmatpush3.bf16.msra.mxu0 %v200_v1  ;;  %v202_v3 = vld [vmem:[%s273_s0] sm:$0xff]  }
   0x3   :  { %192 = vmatprep.subr.bf16.mxu0 %v207_v0  ;;  %v184_v10 = vld [vmem:[%s274_s2] sm:$0xff]  }
   0x4   :  { %v185_v13 = vunpack.c.l.bf16 %v184_v10  ;;  %v186_v16 = vunpack.c.h.bf16 %v184_v10  ;;  %v177_v38 = vld [vmem:[%s275_s3] ss:$0 sm:$0xff] }
   0x5   :  { %v178_v40 = vld [vmem:[%s276_s4] ss:$0 sm:$0xff] }
   0x6   :  { %193 = vmatpush3.bf16.msra.mxu0 %v201_v2 }
   0x8   :  { %v28_v4 = vld [vmem:[#allocation2] sm:$0xff]  ;;  %v29_v8 = vld [vmem:[#allocation2 + $0x8] sm:$0xff] }
   0x9   :  { %195 = vmatmul.mubr.msk.bf16.vlgmr.msra.gmra.mxu0 %vm25_vm0, %v202_v3 }
  0xc9   :  { %v91_v5 = vpop.f32.mrf.mxu0 }
  0xca   :  { %v98_v6 = vadd.f32 %v91_v5, %v28_v4 }
  0xcb   :  { %v196_v7 = vpop.f32.mrf.mxu0 }
  0xcc   :  { %100 = vst.msk [vmem:[#allocation2] sm:$0xff] %vm25_vm0, %v98_v6 }
  0xcd   :  { %v94_v9 = vpop.f32.mrf.mxu0 }
  0xce   :  { %v99_v11 = vadd.f32 %v94_v9, %v29_v8 }
  0xcf   :  { %v197_v12 = vpop.f32.mrf.mxu0 }
  0xd0   :  { %101 = vst.msk [vmem:[#allocation2 + $0x8] sm:$0xff] %vm25_vm0, %v99_v11 }
  0xd3   :  { %v105_v14 = vld [vmem:[#allocation2] sm:$0xff] }
  0xd4   :  { %v111_v15 = vadd.f32 %v185_v13, %v105_v14 }
  0xd6   :  { %v113_v17 = vsel %vm25_vm0, %v111_v15, 0.0 }
  0xd7   :  { %114 = vadd.xlane.f32.xlu0 %v113_v17  ;;  %v106_v18 = vld [vmem:[#allocation2 + $0x8] sm:$0xff] }
  0xd8   :  { %v112_v19 = vadd.f32 %v186_v16, %v106_v18 }
  0xda   :  { %v116_v20 = vsel %vm25_vm0, %v112_v19, 0.0 }
  0xdb   :  { %117 = vadd.xlane.f32.xlu0 %v116_v20 }
 0x160   :  { %v115_v21 = vpop.xlane.xlu0 %114 }
 0x161   :  { %v120_v22 = vmul.f32 0.03125, %v115_v21 }
 0x163   :  { %v122_v23 = vsub.f32 %v111_v15, %v120_v22 }
 0x164   :  { %v118_v24 = vpop.xlane.xlu0 %117 }
 0x165   :  { %v121_v25 = vmul.f32 0.03125, %v118_v24  ;;  %v124_v26 = vmul.f32 %v122_v23, %v122_v23 }
 0x167   :  { %v123_v27 = vsub.f32 %v112_v19, %v121_v25  ;;  %v126_v28 = vsel %vm25_vm0, %v124_v26, 0.0 }
 0x168   :  { %127 = vadd.xlane.f32.xlu1 %v126_v28 }
 0x169   :  { %v125_v29 = vmul.f32 %v123_v27, %v123_v27 }
 0x16b   :  { %v129_v30 = vsel %vm25_vm0, %v125_v29, 0.0 }
 0x16c   :  { %130 = vadd.xlane.f32.xlu1 %v129_v30 }
 0x1f1   :  { %v128_v31 = vpop.xlane.xlu1 %127 }
 0x1f2   :  { %v132_v32 = vmul.f32 0.03125, %v128_v31 }
 0x1f4   :  { %v134_v33 = vadd.f32 1e-05, %v132_v32 }
 0x1f5   :  { %v131_v34 = vpop.xlane.xlu1 %130 }
 0x1f6   :  { %203 = vrsqrt.f32 %v134_v33  ;;  %v133_v35 = vmul.f32 0.03125, %v131_v34 }
 0x1f8   :  { %v135_v36 = vadd.f32 1e-05, %v133_v35 }
 0x1fa   :  { %205 = vrsqrt.f32 %v135_v36 }
 0x203   :  { %v204_v37 = vpop.eup %203 }
 0x204   :  { %v138_v39 = vmul.f32 %v204_v37, %v122_v23 }
 0x206   :  { %v147_v41 = vmul.f32 %v177_v38, %v138_v39 }
 0x207   :  { %v206_v42 = vpop.eup %205 }
 0x208   :  { %v156_v43 = vadd.f32 %v178_v40, %v147_v41  ;;  %v139_v44 = vmul.f32 %v206_v42, %v123_v27 }
 0x20a   :  { %v181_v45 = vpack.c.bf16 %v156_v43, %v156_v43  ;;  %v148_v46 = vmul.f32 %v177_v38, %v139_v44 }
 0x20c   :  { %167 = vst.msk [vmem:[%s277_s5] sm:$0xf] %vm166_vm2, %v181_v45  ;;  %v157_v47 = vadd.f32 %v178_v40, %v148_v46 }
 0x20e   :  { %v182_v48 = vpack.c.bf16 %v157_v47, %v157_v47 }
 0x210   :  { %168 = vst.msk [vmem:[%s277_s5 + $0x4] sm:$0xf] %vm166_vm2, %v182_v48 }

// kernel: _lambda_.15
= control target key start
LH: loop header
LB: loop body
LE: loop exit
PB: predicated region body
PF: predicated region fallthrough
CT: control target
= control target key end

     0   :  { %vm31_vm0 = vcmask 261120   ;;  %v337_v0 = vmov 0.0   ;;  %vm338_vm1 = vmmov 0   ;;  %vm146_vm2 = vcmask 523264   ;;  %s430_s1 = inlined_call_operand.vmem [shape: bf16[32,64], index: 1, kind: input, shape index: {}]   ;;  %s431_s3 = inlined_call_operand.vmem [shape: bf16[64,32], index: 3, kind: input, shape index: {}]   ;;  %s432_s0 = inlined_call_operand.vmem [shape: bf16[16,32], index: 0, kind: input, shape index: {}]   ;;  %s433_s2 = inlined_call_operand.vmem [shape: f32[1,64], index: 2, kind: input, shape index: {}]   ;;  %s434_s4 = inlined_call_operand.vmem [shape: f32[1,32], index: 4, kind: input, shape index: {}]   ;;  %s435_s5 = inlined_call_operand.vmem [shape: f32[1,32], index: 5, kind: input, shape index: {}]   ;;  %s436_s6 = inlined_call_operand.vmem [shape: f32[1,32], index: 6, kind: input, shape index: {}]   ;;  %s437_s7 = inlined_call_operand.vmem [shape: bf16[16,32], index: 7, kind: output, shape index: {}]  }
   0x1   :  { %304 = vmatprep.subr.bf16.mxu0 %v337_v0  ;;  %v326_v1 = vld [vmem:[%s430_s1 + $0x8] sm:$0xff]   ;;  %308 = vmatprep.mubr.msk.bf16.mxu0 %vm338_vm1, %v337_v0  ;;  %32 = vst.msk [vmem:[#allocation2] sm:$0xff] %vm31_vm0, %v337_v0  ;;  %33 = vst.msk [vmem:[#allocation2 + $0x8] sm:$0xff] %vm31_vm0, %v337_v0  ;;  %v327_v2 = vld [vmem:[%s430_s1] sm:$0xff]   ;;  %vm268_vm3 = vcmask 257024  }
   0x2   :  { %312 = vmatprep.subr.bf16.mxu1 %v337_v0  ;;  %320 = vmatprep.mubr.msk.bf16.mxu1 %vm338_vm1, %v337_v0  ;;  %v329_v3 = vld [vmem:[%s431_s3 + $0x18] sm:$0xff]   ;;  %v328_v4 = vld [vmem:[%s432_s0] sm:$0xff]   ;;  %v330_v5 = vld [vmem:[%s431_s3 + $0x10] sm:$0xff]  }
   0x3   :  { %305 = vmatpush3.bf16.msra.mxu0 %v326_v1  ;;  %313 = vmatpush3.bf16.msra.mxu1 %v329_v3  ;;  %v331_v6 = vld [vmem:[%s431_s3 + $0x8] sm:$0xff]   ;;  %v332_v7 = vld [vmem:[%s431_s3] sm:$0xff]  }
   0x4   :  { %306 = vmatprep.subr.bf16.mxu0 %v337_v0  ;;  %314 = vmatprep.subr.bf16.mxu1 %v337_v0  ;;  %v275_v8 = vld [vmem:[%s433_s2] ss:$0 sm:$0xff] }
   0x5   :  { %v293_v26 = vld [vmem:[%s432_s0] sm:$0xff]  }
   0x6   :  { %v285_v27 = vld [vmem:[%s434_s4] ss:$0 sm:$0xff]  ;;  %v294_v28 = vunpack.c.l.bf16 %v293_v26  ;;  %v295_v32 = vunpack.c.h.bf16 %v293_v26 }
   0x7   :  { %307 = vmatpush3.bf16.msra.mxu0 %v327_v2  ;;  %315 = vmatpush3.bf16.msra.mxu1 %v330_v5  ;;  %v286_v55 = vld [vmem:[%s435_s5] ss:$0 sm:$0xff] }
   0x8   :  { %316 = vmatprep.subr.bf16.mxu1 %v337_v0  ;;  %v111_v18 = vld [vmem:[#allocation2] sm:$0xff]  ;;  %v112_v22 = vld [vmem:[#allocation2 + $0x8] sm:$0xff] }
   0x9   :  { %v287_v57 = vld [vmem:[%s436_s6] ss:$0 sm:$0xff] }
   0xa   :  { %309 = vmatmul.mubr.msk.bf16.vlgmr.msra.gmra.mxu0 %vm31_vm0, %v328_v4 }
   0xb   :  { %317 = vmatpush3.bf16.msra.mxu1 %v331_v6 }
   0xc   :  { %318 = vmatprep.subr.bf16.mxu1 %v337_v0 }
   0xf   :  { %319 = vmatpush3.bf16.msra.mxu1 %v332_v7 }
  0xca   :  { %v102_v9 = vpop.f32.mrf.mxu0 }
  0xcb   :  { %v103_v11 = vadd.f32 %v275_v8, %v102_v9 }
  0xcc   :  { %v310_v10 = vpop.f32.mrf.mxu0 }
  0xcd   :  { %v109_v15 = vmax.f32 %v103_v11, 0.0 }
  0xce   :  { %v105_v12 = vpop.f32.mrf.mxu0 }
  0xcf   :  { %v106_v13 = vadd.f32 %v275_v8, %v105_v12 }
  0xd0   :  { %v311_v14 = vpop.f32.mrf.mxu0 }
  0xd1   :  { %v110_v16 = vmax.f32 %v106_v13, 0.0 }
  0xd3   :  { %v113_v17 = vpack.c.bf16 %v110_v16, %v109_v15 }
  0xd5   :  { %321 = vmatmul.mubr.msk.bf16.vlgmr.msra.gmra.mxu1 %vm146_vm2, %v113_v17 }
 0x195   :  { %v184_v19 = vpop.f32.mrf.mxu1 }
 0x196   :  { %v191_v20 = vadd.f32 %v184_v19, %v111_v18 }
 0x197   :  { %v322_v21 = vpop.f32.mrf.mxu1 }
 0x198   :  { %193 = vst.msk [vmem:[#allocation2] sm:$0xff] %vm31_vm0, %v191_v20 }
 0x199   :  { %v187_v23 = vpop.f32.mrf.mxu1 }
 0x19a   :  { %v192_v24 = vadd.f32 %v187_v23, %v112_v22 }
 0x19b   :  { %v323_v25 = vpop.f32.mrf.mxu1 }
 0x19c   :  { %194 = vst.msk [vmem:[#allocation2 + $0x8] sm:$0xff] %vm31_vm0, %v192_v24 }
 0x19f   :  { %v198_v29 = vld [vmem:[#allocation2] sm:$0xff] }
 0x1a0   :  { %v207_v30 = vadd.f32 %v285_v27, %v198_v29 }
 0x1a2   :  { %v213_v31 = vadd.f32 %v294_v28, %v207_v30 }
 0x1a3   :  { %v199_v33 = vld [vmem:[#allocation2 + $0x8] sm:$0xff] }
 0x1a4   :  { %v215_v34 = vsel %vm31_vm0, %v213_v31, 0.0  ;;  %v208_v35 = vadd.f32 %v285_v27, %v199_v33 }
 0x1a5   :  { %216 = vadd.xlane.f32.xlu0 %v215_v34 }
 0x1a6   :  { %v214_v36 = vadd.f32 %v295_v32, %v208_v35 }
 0x1a8   :  { %v218_v37 = vsel %vm31_vm0, %v214_v36, 0.0 }
 0x1a9   :  { %219 = vadd.xlane.f32.xlu0 %v218_v37 }
 0x22e   :  { %v217_v38 = vpop.xlane.xlu0 %216 }
 0x22f   :  { %v222_v39 = vmul.f32 0.03125, %v217_v38 }
 0x231   :  { %v224_v40 = vsub.f32 %v213_v31, %v222_v39 }
 0x232   :  { %v220_v41 = vpop.xlane.xlu0 %219 }
 0x233   :  { %v223_v42 = vmul.f32 0.03125, %v220_v41  ;;  %v226_v43 = vmul.f32 %v224_v40, %v224_v40 }
 0x235   :  { %v225_v44 = vsub.f32 %v214_v36, %v223_v42  ;;  %v228_v45 = vsel %vm31_vm0, %v226_v43, 0.0 }
 0x236   :  { %229 = vadd.xlane.f32.xlu1 %v228_v45 }
 0x237   :  { %v227_v46 = vmul.f32 %v225_v44, %v225_v44 }
 0x239   :  { %v231_v47 = vsel %vm31_vm0, %v227_v46, 0.0 }
 0x23a   :  { %232 = vadd.xlane.f32.xlu1 %v231_v47 }
 0x2bf   :  { %v230_v48 = vpop.xlane.xlu1 %229 }
 0x2c0   :  { %v234_v49 = vmul.f32 0.03125, %v230_v48 }
 0x2c2   :  { %v236_v50 = vadd.f32 1e-05, %v234_v49 }
 0x2c3   :  { %v233_v51 = vpop.xlane.xlu1 %232 }
 0x2c4   :  { %333 = vrsqrt.f32 %v236_v50  ;;  %v235_v52 = vmul.f32 0.03125, %v233_v51 }
 0x2c6   :  { %v237_v53 = vadd.f32 1e-05, %v235_v52 }
 0x2c8   :  { %335 = vrsqrt.f32 %v237_v53 }
 0x2d1   :  { %v334_v54 = vpop.eup %333 }
 0x2d2   :  { %v240_v56 = vmul.f32 %v334_v54, %v224_v40 }
 0x2d4   :  { %v249_v58 = vmul.f32 %v286_v55, %v240_v56 }
 0x2d5   :  { %v336_v59 = vpop.eup %335 }
 0x2d6   :  { %v258_v60 = vadd.f32 %v287_v57, %v249_v58  ;;  %v241_v61 = vmul.f32 %v336_v59, %v225_v44 }
 0x2d8   :  { %v290_v62 = vpack.c.bf16 %v258_v60, %v258_v60  ;;  %v250_v63 = vmul.f32 %v286_v55, %v241_v61 }
 0x2da   :  { %269 = vst.msk [vmem:[%s437_s7] sm:$0xf] %vm268_vm3, %v290_v62  ;;  %v259_v0 = vadd.f32 %v287_v57, %v250_v63 }
 0x2dc   :  { %v291_v1 = vpack.c.bf16 %v259_v0, %v259_v0 }
 0x2de   :  { %270 = vst.msk [vmem:[%s437_s7 + $0x4] sm:$0xf] %vm268_vm3, %v291_v1 }

// kernel: _lambda_.21
= control target key start
LH: loop header
LB: loop body
LE: loop exit
PB: predicated region body
PF: predicated region fallthrough
CT: control target
= control target key end

     0   :  { %v243_v0 = vmov 0.0   ;;  %vm244_vm0 = vmmov 0   ;;  %vm59_vm1 = vcmask 261120   ;;  %v245_v4 = vmov 0   ;;  %s316_s1 = inlined_call_operand.vmem [shape: bf16[32,64], index: 1, kind: input, shape index: {}]   ;;  %s317_s0 = inlined_call_operand.vmem [shape: bf16[16,32], index: 0, kind: input, shape index: {}]   ;;  %s318_s2 = inlined_call_operand.vmem [shape: f32[1,64], index: 2, kind: input, shape index: {}]   ;;  %s319_s3 = inlined_call_operand.vmem [shape: s32[16,1], index: 3, kind: input, shape index: {}]   ;;  %s320_s4 = inlined_call_operand.vmem [shape: f32[16,1], index: 4, kind: output, shape index: {}]  }
   0x1   :  { %214 = vmatprep.subr.bf16.mxu0 %v243_v0  ;;  %v228_v1 = vld [vmem:[%s316_s1 + $0x8] sm:$0xff]   ;;  %218 = vmatprep.mubr.msk.bf16.mxu0 %vm244_vm0, %v243_v0  ;;  %v229_v2 = vld [vmem:[%s316_s1] sm:$0xff]   ;;  %vm22_vm2 = vcmask 7168   ;;  %v246_v5 = vmov -inf   ;;  %vm123_vm3 = vcmask 523264   ;;  %v104_v23 = vlaneseq }
   0x2   :  { %215 = vmatpush3.bf16.msra.mxu0 %v228_v1  ;;  %v230_v3 = vld [vmem:[%s317_s0] sm:$0xff]   ;;  %227 = vset.pattern.permute.xlu0 %v245_v4  ;;  %23 = vst.msk [vmem:[#allocation2] sm:$0xff] %vm22_vm2, %v246_v5  ;;  %24 = vst.msk [vmem:[#allocation2 + $0x8] sm:$0xff] %vm22_vm2, %v246_v5  ;;  %v110_v25 = vld [vmem:[%s319_s3 + $0x8] sm:$0xff] }
   0x3   :  { %216 = vmatprep.subr.bf16.mxu0 %v243_v0  ;;  %226 = vset.pattern.permute.xlu1 %v245_v4  ;;  %25 = vst.msk [vmem:[#allocation3] sm:$0xff] %vm22_vm2, %v243_v0  ;;  %26 = vst.msk [vmem:[#allocation3 + $0x8] sm:$0xff] %vm22_vm2, %v243_v0  ;;  %v206_v6 = vld [vmem:[%s318_s2] ss:$0 sm:$0xff]  ;;  %v105_v26 = vand.u32 127, %v104_v23 }
   0x4   :  { %27 = vst.msk [vmem:[#allocation4] sm:$0xff] %vm22_vm2, %v243_v0  ;;  %28 = vst.msk [vmem:[#allocation4 + $0x8] sm:$0xff] %vm22_vm2, %v243_v0  ;;  %v109_v15 = vld [vmem:[%s319_s3] sm:$0xff] }
   0x6   :  { %217 = vmatpush3.bf16.msra.mxu0 %v229_v2 }
   0x9   :  { %219 = vmatmul.mubr.msk.bf16.vlgmr.msra.gmra.mxu0 %vm59_vm1, %v230_v3  ;;  %v135_v16 = vld [vmem:[#allocation2] sm:$0xff]  ;;  %v136_v19 = vld [vmem:[#allocation2 + $0x8] sm:$0xff] }
   0xa   :  { %v145_v49 = vld [vmem:[#allocation3] sm:$0xff]  ;;  %v146_v53 = vld [vmem:[#allocation3 + $0x8] sm:$0xff] }
   0xb   :  { %v119_v42 = vld [vmem:[#allocation4] sm:$0xff]  ;;  %v120_v58 = vld [vmem:[#allocation4 + $0x8] sm:$0xff] }
  0xc9   :  { %v97_v7 = vpop.f32.mrf.mxu0 }
  0xca   :  { %v98_v8 = vadd.f32 %v206_v6, %v97_v7 }
  0xcb   :  { %v220_v9 = vpop.f32.mrf.mxu0 }
  0xcc   :  { %v137_v10 = vsel %vm123_vm3, %v98_v8, -inf }
  0xcd   :  { %138 = vmax.xlane.f32.xlu0 %v137_v10  ;;  %v100_v11 = vpop.f32.mrf.mxu0 }
  0xce   :  { %v101_v12 = vadd.f32 %v206_v6, %v100_v11 }
  0xcf   :  { %v221_v13 = vpop.f32.mrf.mxu0 }
  0xd0   :  { %v140_v14 = vsel %vm123_vm3, %v101_v12, -inf }
  0xd1   :  { %141 = vmax.xlane.f32.xlu0 %v140_v14 }
  0xe7   :  { %112 = vperm.xlu0 %227, %v109_v15  }
 0x156   :  { %v139_v17 = vpop.xlane.xlu0 %138 }
 0x157   :  { %v143_v18 = vmax.f32 %v135_v16, %v139_v17 }
 0x159   :  { %v147_v20 = vsub.f32 %v135_v16, %v143_v18  ;;  %181 = vst.msk [vmem:[#allocation2] sm:$0xff] %vm22_vm2, %v143_v18  ;;  %157 = vperm.xlu1 %226, %v143_v18  }
 0x15a   :  { %v142_v21 = vpop.xlane.xlu0 %141 }
 0x15b   :  { %v144_v22 = vmax.f32 %v136_v19, %v142_v21  ;;  %v149_v46 = vmul.f32 1.442695, %v147_v20 }
 0x15d   :  { %v148_v24 = vsub.f32 %v136_v19, %v144_v22  ;;  %182 = vst.msk [vmem:[#allocation2 + $0x8] sm:$0xff] %vm22_vm2, %v144_v22  ;;  %162 = vperm.xlu1 %226, %v144_v22  }
 0x15f   :  { %v151_v47 = vmul.f32 1.442695, %v148_v24 }
 0x160   :  { %v186_v1 = vld [vmem:[#allocation2] sm:$0xff] }
 0x161   :  { %115 = vperm.xlu1 %226, %v110_v25  }
 0x162   :  { %v113_v27 = vpop.permute.xlu0 %112 }
 0x163   :  { %vm117_vm4 = vcmp.eq.s32.totalorder %v105_v26, %v113_v27 }
 0x164   :  { %v121_v28 = vsel %vm117_vm4, %v98_v8, 0.0  ;;  %v187_v7 = vld [vmem:[#allocation2 + $0x8] sm:$0xff] }
 0x165   :  { %v124_v29 = vsel %vm123_vm3, %v121_v28, 0.0 }
 0x166   :  { %125 = vadd.xlane.f32.xlu0 %v124_v29 }
 0x1d4   :  { %v158_v30 = vpop.permute.xlu1 %157 }
 0x1d5   :  { %v165_v31 = vsub.f32 %v98_v8, %v158_v30 }
 0x1d7   :  { %v167_v32 = vmul.f32 1.442695, %v165_v31 }
 0x1d8   :  { %v163_v33 = vpop.permute.xlu1 %162 }
 0x1d9   :  { %231 = vpow2.f32 %v167_v32  ;;  %v166_v34 = vsub.f32 %v101_v12, %v163_v33 }
 0x1db   :  { %v169_v35 = vmul.f32 1.442695, %v166_v34 }
 0x1dc   :  { %v116_v37 = vpop.permute.xlu1 %115 }
 0x1dd   :  { %233 = vpow2.f32 %v169_v35  ;;  %vm118_vm5 = vcmp.eq.s32.totalorder %v105_v26, %v116_v37 }
 0x1de   :  { %v122_v41 = vsel %vm118_vm5, %v101_v12, 0.0  ;;  %235 = vpow2.f32 %v149_v46 }
 0x1df   :  { %v127_v44 = vsel %vm123_vm3, %v122_v41, 0.0  ;;  %237 = vpow2.f32 %v151_v47 }
 0x1e6   :  { %v232_v36 = vpop.eup %231 }
 0x1e7   :  { %v171_v38 = vsel %vm123_vm3, %v232_v36, 0.0 }
 0x1e8   :  { %172 = vadd.xlane.f32.xlu1 %v171_v38 }
 0x1ea   :  { %v234_v39 = vpop.eup %233 }
 0x1eb   :  { %v174_v40 = vsel %vm123_vm3, %v234_v39, 0.0  ;;  %v236_v48 = vpop.eup %235 }
 0x1ec   :  { %175 = vadd.xlane.f32.xlu1 %v174_v40  ;;  %v153_v50 = vmul.f32 %v236_v48, %v145_v49  ;;  %v238_v51 = vpop.eup %237 }
 0x1ed   :  { %v154_v55 = vmul.f32 %v238_v51, %v146_v53 }
 0x1ef   :  { %v126_v43 = vpop.xlane.xlu0 %125 }
 0x1f0   :  { %v130_v45 = vadd.f32 %v126_v43, %v119_v42  ;;  %128 = vadd.xlane.f32.xlu1 %v127_v44 }
 0x1f2   :  { %133 = vst.msk [vmem:[#allocation4] sm:$0xff] %vm22_vm2, %v130_v45 }
 0x1f9   :  { %v196_v4 = vld [vmem:[#allocation4] sm:$0xff] }
 0x271   :  { %v173_v52 = vpop.xlane.xlu1 %172 }
 0x272   :  { %v177_v54 = vadd.f32 %v173_v52, %v153_v50 }
 0x274   :  { %179 = vst.msk [vmem:[#allocation3] sm:$0xff] %vm22_vm2, %v177_v54 }
 0x275   :  { %v176_v56 = vpop.xlane.xlu1 %175 }
 0x276   :  { %v178_v57 = vadd.f32 %v176_v56, %v154_v55 }
 0x278   :  { %180 = vst.msk [vmem:[#allocation3 + $0x8] sm:$0xff] %vm22_vm2, %v178_v57 }
 0x279   :  { %v129_v59 = vpop.xlane.xlu1 %128 }
 0x27a   :  { %v131_v60 = vadd.f32 %v129_v59, %v120_v58 }
 0x27b   :  { %v188_v61 = vld [vmem:[#allocation3] sm:$0xff] }
 0x27c   :  { %239 = vlog2.f32 %v188_v61  ;;  %134 = vst.msk [vmem:[#allocation4 + $0x8] sm:$0xff] %vm22_vm2, %v131_v60 }
 0x27f   :  { %v189_v62 = vld [vmem:[#allocation3 + $0x8] sm:$0xff] }
 0x280   :  { %241 = vlog2.f32 %v189_v62 }
 0x283   :  { %v197_v9 = vld [vmem:[#allocation4 + $0x8] sm:$0xff] }
 0x289   :  { %v240_v63 = vpop.eup %239 }
 0x28a   :  { %v191_v0 = vmul.f32 0.6931472, %v240_v63 }
 0x28c   :  { %v194_v2 = vadd.f32 %v191_v0, %v186_v1 }
 0x28d   :  { %v242_v3 = vpop.eup %241 }
 0x28e   :  { %v198_v5 = vsub.f32 %v194_v2, %v196_v4  ;;  %v193_v6 = vmul.f32 0.6931472, %v242_v3 }
 0x290   :  { %v195_v8 = vadd.f32 %v193_v6, %v187_v7  ;;  %200 = vst.msk [vmem:[%s320_s4] sm:$0xff] %vm22_vm2, %v198_v5 }
 0x292   :  { %v199_v10 = vsub.f32 %v195_v8, %v197_v9 }
 0x294   :  { %201 = vst.msk [vmem:[%s320_s4 + $0x8] sm:$0xff] %vm22_vm2, %v199_v10 }

</bundles_post_ra>
